<compile_context>
chip_gen: v6e
topology: v6e:2x2x1
jax: 0.10.0
libtpu: 0.0.40
codegen_flags: <defaults>
</compile_context>

<pallas_src>
import functools
import math

import jax
import jax.numpy as jnp
import numpy as np
from jax import lax
from jax.experimental import pallas as pl
from jax.experimental.pallas import tpu as pltpu


def _layernorm(x, w, eps=1e-5):
    x = x.astype(jnp.float32)
    mu = jnp.mean(x, axis=-1, keepdims=True)
    var = jnp.mean((x - mu) ** 2, axis=-1, keepdims=True)
    return (x - mu) * lax.rsqrt(var + eps) * w


def _new_gelu(x):
    c = math.sqrt(2.0 / math.pi)
    return 0.5 * x * (1.0 + jnp.tanh(c * (x + 0.044715 * x * x * x)))


# A(m,k) @ B(k,n)   and   A(m,k) @ B(n,k)^T  (contraction specified, no transpose op)
_CDIM = (((1,), (0,)), ((), ()))
_CDIM_T = (((1,), (1,)), ((), ()))


# ---------------------------------------------------------------------------
# Kernel 1: LN1 + QKV projection (full-width MXU matmuls, computed once).
# ---------------------------------------------------------------------------
def qkv_proj_kernel(x_ref, ln1_w_ref, wq_ref, wk_ref, wv_ref,
                    q_ref, k_ref, v_ref, *, compute_dtype):
    xn = _layernorm(x_ref[...], ln1_w_ref[0]).astype(compute_dtype)      # (r, C)
    q_ref[...] = lax.dot_general(xn, wq_ref[...], _CDIM,
                                 preferred_element_type=jnp.float32).astype(q_ref.dtype)
    k_ref[...] = lax.dot_general(xn, wk_ref[...], _CDIM,
                                 preferred_element_type=jnp.float32).astype(k_ref.dtype)
    v_ref[...] = lax.dot_general(xn, wv_ref[...], _CDIM,
                                 preferred_element_type=jnp.float32).astype(v_ref.dtype)


# ---------------------------------------------------------------------------
# Kernel 2: flash attention (online softmax) + batched out-projection + residual.
# ---------------------------------------------------------------------------
def attn_kernel(x_ref, q_ref, k_ref, v_ref, wout_ref, o_ref,
                ml_sc, acc_sc, *, n_heads, head_dim, compute_dtype, approx_recip):
    ki = pl.program_id(2)
    H, tq = ml_sc.shape[0], ml_sc.shape[1]

    @pl.when(ki == 0)
    def _init():
        # m (running max) packed in lane 0, l (running sum) packed in lane 1.
        ml_sc[:, :, 0:1] = jnp.full((H, tq, 1), -jnp.inf, jnp.float32)
        ml_sc[:, :, 1:2] = jnp.zeros((H, tq, 1), jnp.float32)
        acc_sc[...] = jnp.zeros(acc_sc.shape, acc_sc.dtype)

    # Heads fully unrolled so MXU score/PV pushes co-issue with VPU/EUP softmax.
    for h in range(n_heads):
        lo = h * head_dim
        qh = q_ref[0, :, lo:lo + head_dim]                         # (tq, hd), pre-scaled
        kh = k_ref[0, :, lo:lo + head_dim]                         # (tk, hd)
        vh = v_ref[0, :, lo:lo + head_dim]                         # (tk, hd)
        s = lax.dot_general(qh, kh, _CDIM_T,
                            preferred_element_type=jnp.float32)    # (tq, tk)
        m_prev = ml_sc[h, :, 0:1]
        l_prev = ml_sc[h, :, 1:2]
        m_new = jnp.maximum(m_prev, jnp.max(s, axis=-1, keepdims=True))
        alpha = jnp.exp(m_prev - m_new)
        p = jnp.exp(s - m_new)
        ml_sc[h, :, 0:1] = m_new
        ml_sc[h, :, 1:2] = alpha * l_prev + jnp.sum(p, axis=-1, keepdims=True)
        acc_sc[h] = alpha * acc_sc[h] + lax.dot_general(
            p.astype(compute_dtype), vh, _CDIM,
            preferred_element_type=jnp.float32)

    @pl.when(ki == pl.num_programs(2) - 1)
    def _finalize():
        # Normalize each head, assemble (tq, C), and do ONE full-K out-projection.
        heads = []
        for h in range(n_heads):
            inv_l = pl.reciprocal(ml_sc[h, :, 1:2], approx=approx_recip)
            heads.append((acc_sc[h] * inv_l).astype(compute_dtype))
        y = jnp.concatenate(heads, axis=-1)                         # (tq, C)
        att = lax.dot_general(y, wout_ref[...], _CDIM,
                              preferred_element_type=jnp.float32)
        o_ref[0] = (x_ref[0].astype(jnp.float32) + att).astype(o_ref.dtype)


# ---------------------------------------------------------------------------
# Kernel 3: LN2 + MLP (4C streamed over grid axis) + residual.
# ---------------------------------------------------------------------------
def mlp_kernel(x_ref, ln2_w_ref, wfc_ref, wproj_ref, o_ref,
               h2_sc, acc_sc, *, compute_dtype):
    f = pl.program_id(1)

    @pl.when(f == 0)
    def _init():
        h2_sc[...] = _layernorm(x_ref[...], ln2_w_ref[0]).astype(compute_dtype)
        acc_sc[...] = jnp.zeros(acc_sc.shape, acc_sc.dtype)

    t = lax.dot_general(h2_sc[...], wfc_ref[...], _CDIM,
                        preferred_element_type=jnp.float32)        # (r, chunk)
    g = _new_gelu(t).astype(compute_dtype)                         # GELU in f32 -> cast
    acc_sc[...] += lax.dot_general(g, wproj_ref[...], _CDIM,
                                   preferred_element_type=jnp.float32)

    @pl.when(f == pl.num_programs(1) - 1)
    def _fin():
        o_ref[...] = (x_ref[...].astype(jnp.float32) + acc_sc[...]).astype(o_ref.dtype)


# ---------------------------------------------------------------------------
# Wrapper
# ---------------------------------------------------------------------------
def _const_spec(shape, single_buffer):
    """BlockSpec for a constant-index (weight) input; single-buffered if possible."""
    index_map = lambda *_: (0,) * len(shape)
    if single_buffer:
        try:
            return pl.BlockSpec(shape, index_map, pipeline_mode=pl.Buffered(1))
        except Exception:
            pass
    return pl.BlockSpec(shape, index_map)


def _vmem_limit_bytes():
    try:
        cap = int(pltpu.get_tpu_info().vmem_capacity_bytes)
    except Exception:
        cap = 128 * 2 ** 20                    # v5e / v6e physical VMEM
    return max(int(0.85 * cap), 16 * 2 ** 20)  # ~54 MB on v7x, ~109 MB on v5e/v6e


def _pick_tile(total, preferred):
    if total % preferred == 0:
        return preferred
    for t in (512, 256, 128, 64, 32, 16, 8):
        if t < preferred and total % t == 0:
            return t
    return total


def transformer_block(x, params, n_heads, *, q_tile=None, kv_tile=None,
                      row_tile=None, mlp_chunk=None,
                      compute_dtype=jnp.bfloat16, approx_recip=True,
                      single_buffer_weights=True):
    B, T, C = x.shape
    assert C % n_heads == 0
    hd = C // n_heads
    F = 4 * C
    BT = B * T
    cdt = jnp.dtype(compute_dtype)
    itemsize = cdt.itemsize

    q_tile = _pick_tile(T, 256) if q_tile is None else q_tile
    kv_tile = _pick_tile(T, 256) if kv_tile is None else kv_tile
    row_tile = _pick_tile(BT, 256) if row_tile is None else row_tile
    mlp_chunk = _pick_tile(F, 512) if mlp_chunk is None else mlp_chunk
    assert T % q_tile == 0 and T % kv_tile == 0
    assert BT % row_tile == 0 and F % mlp_chunk == 0

    vmem_limit = _vmem_limit_bytes()

    # ---- one-time weight prep (wrapper side) --------------------------------
    wqkv = params["wqkv"].astype(jnp.float32)
    # module scales q by 1/sqrt(hd) and SDPA scales scores by 1/sqrt(hd):
    # fold the combined 1/hd into Wq (one-time, on the weight).
    wq = (wqkv[:, :C] * (1.0 / float(hd))).astype(cdt)
    wk = wqkv[:, C:2 * C].astype(cdt)
    wv = wqkv[:, 2 * C:].astype(cdt)
    wout = params["wout"].astype(cdt)                    # (C, C)
    wfc = params["wfc"].astype(cdt)                      # (C, 4C)  streamed
    wproj = params["wproj"].astype(cdt)                  # (4C, C)  streamed
    ln1_w = params["ln1_w"].reshape(1, C).astype(jnp.float32)
    ln2_w = params["ln2_w"].reshape(1, C).astype(jnp.float32)

    # ---------------- kernel 1: LN1 + QKV projection -------------------------
    x2d = x.reshape(BT, C)
    qkv_cost = pl.CostEstimate(
        flops=int(2 * BT * C * 3 * C), transcendentals=0,
        bytes_accessed=int(BT * C * 4 + 3 * C * C * itemsize + 3 * BT * C * itemsize))
    q2d, k2d, v2d = pl.pallas_call(
        functools.partial(qkv_proj_kernel, compute_dtype=cdt),
        out_shape=[jax.ShapeDtypeStruct((BT, C), cdt)] * 3,
        grid=(BT // row_tile,),
        in_specs=[
            pl.BlockSpec((row_tile, C), lambda r: (r, 0)),
            _const_spec((1, C), single_buffer_weights),
            _const_spec((C, C), single_buffer_weights),
            _const_spec((C, C), single_buffer_weights),
            _const_spec((C, C), single_buffer_weights),
        ],
        out_specs=[pl.BlockSpec((row_tile, C), lambda r: (r, 0))] * 3,
        compiler_params=pltpu.CompilerParams(
            dimension_semantics=("parallel",), vmem_limit_bytes=vmem_limit),
        cost_estimate=qkv_cost,
    )(x2d, ln1_w, wq, wk, wv)
    q = q2d.reshape(B, T, C)
    k = k2d.reshape(B, T, C)
    v = v2d.reshape(B, T, C)

    # ---------------- kernel 2: flash attention + out-proj + residual --------
    n_q, n_kv = T // q_tile, T // kv_tile
    attn_cost = pl.CostEstimate(
        flops=int(2 * B * (2 * T * T * C + T * C * C)),
        transcendentals=int(B * n_heads * T * T),
        bytes_accessed=int(B * T * C * (8 + itemsize * (1 + 2 * n_q)) + C * C * itemsize))
    x1 = pl.pallas_call(
        functools.partial(attn_kernel, n_heads=n_heads, head_dim=hd,
                          compute_dtype=cdt, approx_recip=approx_recip),
        out_shape=jax.ShapeDtypeStruct((B, T, C), jnp.float32),
        grid=(B, n_q, n_kv),
        in_specs=[
            pl.BlockSpec((1, q_tile, C), lambda b, qi, ki: (b, qi, 0)),   # x (residual)
            pl.BlockSpec((1, q_tile, C), lambda b, qi, ki: (b, qi, 0)),   # q
            pl.BlockSpec((1, kv_tile, C), lambda b, qi, ki: (b, ki, 0)),  # k
            pl.BlockSpec((1, kv_tile, C), lambda b, qi, ki: (b, ki, 0)),  # v
            _const_spec((C, C), single_buffer_weights),                   # Wout
        ],
        out_specs=pl.BlockSpec((1, q_tile, C), lambda b, qi, ki: (b, qi, 0)),
        scratch_shapes=[
            pltpu.VMEM((n_heads, q_tile, 128), jnp.float32),  # packed m (lane 0) / l (lane 1)
            pltpu.VMEM((n_heads, q_tile, hd), jnp.float32),   # per-head running output
        ],
        compiler_params=pltpu.CompilerParams(
            dimension_semantics=("parallel", "parallel", "arbitrary"),
            vmem_limit_bytes=vmem_limit),
        cost_estimate=attn_cost,
    )(x, q, k, v, wout)

    # ---------------- kernel 3: LN2 + MLP + residual --------------------------
    n_r, n_f = BT // row_tile, F // mlp_chunk
    mlp_cost = pl.CostEstimate(
        flops=int(2 * BT * C * 2 * F), transcendentals=int(BT * F),
        bytes_accessed=int(2 * BT * C * 4 + 2 * C * F * itemsize))
    x1_2d = x1.reshape(BT, C)
    out = pl.pallas_call(
        functools.partial(mlp_kernel, compute_dtype=cdt),
        out_shape=jax.ShapeDtypeStruct((BT, C), jnp.float32),
        grid=(n_r, n_f),
        in_specs=[
            pl.BlockSpec((row_tile, C), lambda r, f: (r, 0)),             # x1
            _const_spec((1, C), single_buffer_weights),                   # LN2 weight
            pl.BlockSpec((C, mlp_chunk), lambda r, f: (0, f)),            # Wfc chunk
            pl.BlockSpec((mlp_chunk, C), lambda r, f: (f, 0)),            # Wproj chunk
        ],
        out_specs=pl.BlockSpec((row_tile, C), lambda r, f: (r, 0)),
        scratch_shapes=[
            pltpu.VMEM((row_tile, C), cdt),           # LN2(x1), computed once per row tile
            pltpu.VMEM((row_tile, C), jnp.float32),   # MLP accumulator
        ],
        compiler_params=pltpu.CompilerParams(
            dimension_semantics=("parallel", "arbitrary"),
            vmem_limit_bytes=vmem_limit),
        cost_estimate=mlp_cost,
    )(x1_2d, ln2_w, wfc, wproj)
    return out.reshape(B, T, C)


# ---------------- pure-JAX reference (for verification) ----------------
def reference_block(x, params, n_heads):
    B, T, C = x.shape
    hd = C // n_heads
    h = _layernorm(x, params["ln1_w"])
    qkv = h @ params["wqkv"]
    q, k, v = qkv[..., :C], qkv[..., C:2 * C], qkv[..., 2 * C:]

    def split_heads(t):
        return t.reshape(B, T, n_heads, hd).transpose(0, 2, 1, 3)

    q, k, v = split_heads(q), split_heads(k), split_heads(v)
    q = q / math.sqrt(float(hd))
    s = jnp.einsum("bhtd,bhsd->bhts", q, k) / math.sqrt(float(hd))
    p = jax.nn.softmax(s, axis=-1)
    y = jnp.einsum("bhts,bhsd->bhtd", p, v).transpose(0, 2, 1, 3).reshape(B, T, C)
    x = x + y @ params["wout"]
    h2 = _layernorm(x, params["ln2_w"])
    return x + _new_gelu(h2 @ params["wfc"]) @ params["wproj"]


def init_params(key, C):
    ks = jax.random.split(key, 6)

    def lin(k, fan_in, fan_out):
        bound = 1.0 / math.sqrt(fan_in)
        return jax.random.uniform(k, (fan_in, fan_out), jnp.float32, -bound, bound)

    return {
        "ln1_w": jax.random.uniform(ks[0], (C,), jnp.float32, 0.5, 1.5),
        "wqkv": lin(ks[1], C, 3 * C),
        "wout": lin(ks[2], C, C),
        "ln2_w": jax.random.uniform(ks[3], (C,), jnp.float32, 0.5, 1.5),
        "wfc": lin(ks[4], C, 4 * C),
        "wproj": lin(ks[5], 4 * C, C),
    }


if __name__ == "__main__":
    # TODO(synk): nn.Dropout in training mode is not implemented; this kernel
    # matches the module's eval-mode forward (dropout = identity).
    B, T, C, n_heads = 2, 16, 64, 4
    key = jax.random.PRNGKey(0)
    kx, kp = jax.random.split(key)
    x = jax.random.normal(kx, (B, T, C), jnp.float32)
    params = init_params(kp, C)

    ref = jax.block_until_ready(reference_block(x, params, n_heads))

    # Small tiles so the flash kv sweep, q tiling, row tiling and MLP-chunk
    # streaming (2x2x2 attention grid, 2-chunk MLP grid) are all exercised.
    test_kwargs = dict(q_tile=8, kv_tile=8, row_tile=16, mlp_chunk=128)

    # f32 compute + exact reciprocal -> tight check.  Try single-buffered
    # constant weights first; fall back to default buffering if unsupported.
    try:
        out_f32 = transformer_block(x, params, n_heads, compute_dtype=jnp.float32,
                                    approx_recip=False, single_buffer_weights=True,
                                    **test_kwargs)
        out_f32 = jax.block_until_ready(out_f32)
        sb = True
    except Exception:
        sb = False
        out_f32 = jax.block_until_ready(
            transformer_block(x, params, n_heads, compute_dtype=jnp.float32,
                              approx_recip=False, single_buffer_weights=False,
                              **test_kwargs))
    np.testing.assert_allclose(np.asarray(out_f32), np.asarray(ref),
                               rtol=1e-3, atol=1e-3)

    # bf16 MXU operands + approximate reciprocal -> looser check.
    out_bf16 = transformer_block(x, params, n_heads, compute_dtype=jnp.bfloat16,
                                 approx_recip=True, single_buffer_weights=sb,
                                 **test_kwargs)
    out_bf16 = jax.block_until_ready(out_bf16)
    np.testing.assert_allclose(np.asarray(out_bf16), np.asarray(ref),
                               rtol=5e-2, atol=5e-2)

    print("KERNEL_OK")
</pallas_src>

<mosaic_0001>
module attributes {stable_mosaic.version = 11 : i64} {
  func.func @qkv_proj_kernel(%arg0: i32, %arg1: memref<16x64xf32, #tpu.memory_space<vmem>>, %arg2: memref<1x64xf32, #tpu.memory_space<vmem>>, %arg3: memref<64x64xf32, #tpu.memory_space<vmem>>, %arg4: memref<64x64xf32, #tpu.memory_space<vmem>>, %arg5: memref<64x64xf32, #tpu.memory_space<vmem>>, %arg6: memref<16x64xf32, #tpu.memory_space<vmem>>, %arg7: memref<16x64xf32, #tpu.memory_space<vmem>>, %arg8: memref<16x64xf32, #tpu.memory_space<vmem>>) attributes {dimension_semantics = [#tpu.dimension_semantics<parallel>], iteration_bounds = array<i64: 2>, scalar_prefetch = 0 : i64, scratch_operands = 0 : i64, tpu.core_type = #tpu.core_type<tc>, window_params = [{transform_indices = @transform_0, window_bounds = array<i64: 16, 64>}, {pipeline_mode = #tpu.pipeline_mode<synchronous>, transform_indices = @transform_1, window_bounds = array<i64: 1, 64>}, {pipeline_mode = #tpu.pipeline_mode<synchronous>, transform_indices = @transform_2, window_bounds = array<i64: 64, 64>}, {pipeline_mode = #tpu.pipeline_mode<synchronous>, transform_indices = @transform_3, window_bounds = array<i64: 64, 64>}, {pipeline_mode = #tpu.pipeline_mode<synchronous>, transform_indices = @transform_4, window_bounds = array<i64: 64, 64>}, {transform_indices = @transform_5, window_bounds = array<i64: 16, 64>}, {transform_indices = @transform_6, window_bounds = array<i64: 16, 64>}, {transform_indices = @transform_7, window_bounds = array<i64: 16, 64>}]} {
    %c0 = arith.constant 0 : index
    %c0_0 = arith.constant 0 : index
    %0 = vector.load %arg1[%c0, %c0_0] : memref<16x64xf32, #tpu.memory_space<vmem>>, vector<16x64xf32>
    %c0_1 = arith.constant 0 : index
    %c0_2 = arith.constant 0 : index
    %1 = vector.load %arg2[%c0_1, %c0_2] : memref<1x64xf32, #tpu.memory_space<vmem>>, vector<1x64xf32>
    %2 = vector.shape_cast %1 : vector<1x64xf32> to vector<64xf32>
    %cst = arith.constant dense<0.000000e+00> : vector<16xf32>
    %3 = vector.multi_reduction <add>, %0, %cst [1] : vector<16x64xf32> to vector<16xf32>
    %4 = vector.shape_cast %3 : vector<16xf32> to vector<16x1xf32>
    %cst_3 = arith.constant 6.400000e+01 : f32
    %5 = vector.broadcast %cst_3 : f32 to vector<16x1xf32>
    %6 = arith.divf %4, %5 : vector<16x1xf32>
    %7 = vector.broadcast %6 : vector<16x1xf32> to vector<16x64xf32>
    %8 = arith.subf %0, %7 : vector<16x64xf32>
    %9 = arith.mulf %8, %8 : vector<16x64xf32>
    %cst_4 = arith.constant dense<0.000000e+00> : vector<16xf32>
    %10 = vector.multi_reduction <add>, %9, %cst_4 [1] : vector<16x64xf32> to vector<16xf32>
    %11 = vector.shape_cast %10 : vector<16xf32> to vector<16x1xf32>
    %cst_5 = arith.constant 6.400000e+01 : f32
    %12 = vector.broadcast %cst_5 : f32 to vector<16x1xf32>
    %13 = arith.divf %11, %12 : vector<16x1xf32>
    %14 = vector.broadcast %6 : vector<16x1xf32> to vector<16x64xf32>
    %15 = arith.subf %0, %14 : vector<16x64xf32>
    %cst_6 = arith.constant 9.99999974E-6 : f32
    %16 = vector.broadcast %cst_6 : f32 to vector<16x1xf32>
    %17 = arith.addf %13, %16 : vector<16x1xf32>
    %18 = math.rsqrt %17 : vector<16x1xf32>
    %19 = vector.broadcast %18 : vector<16x1xf32> to vector<16x64xf32>
    %20 = arith.mulf %15, %19 : vector<16x64xf32>
    %21 = vector.shape_cast %2 : vector<64xf32> to vector<1x64xf32>
    %22 = vector.broadcast %21 : vector<1x64xf32> to vector<16x64xf32>
    %23 = arith.mulf %20, %22 : vector<16x64xf32>
    %c0_7 = arith.constant 0 : index
    %c0_8 = arith.constant 0 : index
    %24 = vector.load %arg3[%c0_7, %c0_8] : memref<64x64xf32, #tpu.memory_space<vmem>>, vector<64x64xf32>
    %cst_9 = arith.constant dense<0.000000e+00> : vector<16x64xf32>
    %25 = tpu.matmul %23, %24, %cst_9 {dimension_numbers = #tpu.dot_dimension_numbers<[1], [0], [0], [1], [0, 0, 1, 1], [], []>} : vector<16x64xf32>, vector<64x64xf32>, vector<16x64xf32> -> vector<16x64xf32>
    %c0_10 = arith.constant 0 : index
    %c0_11 = arith.constant 0 : index
    %26 = vector.load %arg6[%c0_10, %c0_11] : memref<16x64xf32, #tpu.memory_space<vmem>>, vector<16x64xf32>
    tpu.vector_store %arg6[%c0_10, %c0_11], %25 {strides = array<i32>} : memref<16x64xf32, #tpu.memory_space<vmem>>, vector<16x64xf32>,
    %c0_12 = arith.constant 0 : index
    %c0_13 = arith.constant 0 : index
    %27 = vector.load %arg4[%c0_12, %c0_13] : memref<64x64xf32, #tpu.memory_space<vmem>>, vector<64x64xf32>
    %cst_14 = arith.constant dense<0.000000e+00> : vector<16x64xf32>
    %28 = tpu.matmul %23, %27, %cst_14 {dimension_numbers = #tpu.dot_dimension_numbers<[1], [0], [0], [1], [0, 0, 1, 1], [], []>} : vector<16x64xf32>, vector<64x64xf32>, vector<16x64xf32> -> vector<16x64xf32>
    %c0_15 = arith.constant 0 : index
    %c0_16 = arith.constant 0 : index
    %29 = vector.load %arg7[%c0_15, %c0_16] : memref<16x64xf32, #tpu.memory_space<vmem>>, vector<16x64xf32>
    tpu.vector_store %arg7[%c0_15, %c0_16], %28 {strides = array<i32>} : memref<16x64xf32, #tpu.memory_space<vmem>>, vector<16x64xf32>,
    %c0_17 = arith.constant 0 : index
    %c0_18 = arith.constant 0 : index
    %30 = vector.load %arg5[%c0_17, %c0_18] : memref<64x64xf32, #tpu.memory_space<vmem>>, vector<64x64xf32>
    %cst_19 = arith.constant dense<0.000000e+00> : vector<16x64xf32>
    %31 = tpu.matmul %23, %30, %cst_19 {dimension_numbers = #tpu.dot_dimension_numbers<[1], [0], [0], [1], [0, 0, 1, 1], [], []>} : vector<16x64xf32>, vector<64x64xf32>, vector<16x64xf32> -> vector<16x64xf32>
    %c0_20 = arith.constant 0 : index
    %c0_21 = arith.constant 0 : index
    %32 = vector.load %arg8[%c0_20, %c0_21] : memref<16x64xf32, #tpu.memory_space<vmem>>, vector<16x64xf32>
    tpu.vector_store %arg8[%c0_20, %c0_21], %31 {strides = array<i32>} : memref<16x64xf32, #tpu.memory_space<vmem>>, vector<16x64xf32>,
    return
  }
  func.func @transform_0(%arg0: i32) -> (i32, i32) {
    %c0_i32 = arith.constant 0 : i32
    %c0_i32_0 = arith.constant 0 : i32
    return %arg0, %c0_i32 : i32, i32
  }
  func.func @transform_1(%arg0: i32) -> (i32, i32) {
    %c0_i32 = arith.constant 0 : i32
    %c0_i32_0 = arith.constant 0 : i32
    %c0_i32_1 = arith.constant 0 : i32
    return %c0_i32, %c0_i32_0 : i32, i32
  }
  func.func @transform_2(%arg0: i32) -> (i32, i32) {
    %c0_i32 = arith.constant 0 : i32
    %c0_i32_0 = arith.constant 0 : i32
    %c0_i32_1 = arith.constant 0 : i32
    return %c0_i32, %c0_i32_0 : i32, i32
  }
  func.func @transform_3(%arg0: i32) -> (i32, i32) {
    %c0_i32 = arith.constant 0 : i32
    %c0_i32_0 = arith.constant 0 : i32
    %c0_i32_1 = arith.constant 0 : i32
    return %c0_i32, %c0_i32_0 : i32, i32
  }
  func.func @transform_4(%arg0: i32) -> (i32, i32) {
    %c0_i32 = arith.constant 0 : i32
    %c0_i32_0 = arith.constant 0 : i32
    %c0_i32_1 = arith.constant 0 : i32
    return %c0_i32, %c0_i32_0 : i32, i32
  }
  func.func @transform_5(%arg0: i32) -> (i32, i32) {
    %c0_i32 = arith.constant 0 : i32
    %c0_i32_0 = arith.constant 0 : i32
    return %arg0, %c0_i32 : i32, i32
  }
  func.func @transform_6(%arg0: i32) -> (i32, i32) {
    %c0_i32 = arith.constant 0 : i32
    %c0_i32_0 = arith.constant 0 : i32
    return %arg0, %c0_i32 : i32, i32
  }
  func.func @transform_7(%arg0: i32) -> (i32, i32) {
    %c0_i32 = arith.constant 0 : i32
    %c0_i32_0 = arith.constant 0 : i32
    return %arg0, %c0_i32 : i32, i32
  }
}

module attributes {stable_mosaic.version = 11 : i64} {
  func.func @qkv_proj_kernel(%arg0: i32, %arg1: memref<16x64xf32, #tpu.memory_space<vmem>>, %arg2: memref<1x64xf32, #tpu.memory_space<vmem>>, %arg3: memref<64x64xf32, #tpu.memory_space<vmem>>, %arg4: memref<64x64xf32, #tpu.memory_space<vmem>>, %arg5: memref<64x64xf32, #tpu.memory_space<vmem>>, %arg6: memref<16x64xf32, #tpu.memory_space<vmem>>, %arg7: memref<16x64xf32, #tpu.memory_space<vmem>>, %arg8: memref<16x64xf32, #tpu.memory_space<vmem>>) attributes {dimension_semantics = [#tpu.dimension_semantics<parallel>], iteration_bounds = array<i64: 2>, scalar_prefetch = 0 : i64, scratch_operands = 0 : i64, tpu.core_type = #tpu.core_type<tc>, window_params = [{transform_indices = @transform_0, window_bounds = array<i64: 16, 64>}, {pipeline_mode = #tpu.pipeline_mode<synchronous>, transform_indices = @transform_1, window_bounds = array<i64: 1, 64>}, {pipeline_mode = #tpu.pipeline_mode<synchronous>, transform_indices = @transform_2, window_bounds = array<i64: 64, 64>}, {pipeline_mode = #tpu.pipeline_mode<synchronous>, transform_indices = @transform_3, window_bounds = array<i64: 64, 64>}, {pipeline_mode = #tpu.pipeline_mode<synchronous>, transform_indices = @transform_4, window_bounds = array<i64: 64, 64>}, {transform_indices = @transform_5, window_bounds = array<i64: 16, 64>}, {transform_indices = @transform_6, window_bounds = array<i64: 16, 64>}, {transform_indices = @transform_7, window_bounds = array<i64: 16, 64>}]} {
    %c0 = arith.constant 0 : index
    %c0_0 = arith.constant 0 : index
    %0 = vector.load %arg1[%c0, %c0_0] : memref<16x64xf32, #tpu.memory_space<vmem>>, vector<16x64xf32>
    %c0_1 = arith.constant 0 : index
    %c0_2 = arith.constant 0 : index
    %1 = vector.load %arg2[%c0_1, %c0_2] : memref<1x64xf32, #tpu.memory_space<vmem>>, vector<1x64xf32>
    %2 = vector.shape_cast %1 : vector<1x64xf32> to vector<64xf32>
    %cst = arith.constant dense<0.000000e+00> : vector<16xf32>
    %3 = vector.multi_reduction <add>, %0, %cst [1] : vector<16x64xf32> to vector<16xf32>
    %4 = vector.shape_cast %3 : vector<16xf32> to vector<16x1xf32>
    %cst_3 = arith.constant 6.400000e+01 : f32
    %5 = vector.broadcast %cst_3 : f32 to vector<16x1xf32>
    %6 = arith.divf %4, %5 : vector<16x1xf32>
    %7 = vector.broadcast %6 : vector<16x1xf32> to vector<16x64xf32>
    %8 = arith.subf %0, %7 : vector<16x64xf32>
    %9 = arith.mulf %8, %8 : vector<16x64xf32>
    %cst_4 = arith.constant dense<0.000000e+00> : vector<16xf32>
    %10 = vector.multi_reduction <add>, %9, %cst_4 [1] : vector<16x64xf32> to vector<16xf32>
    %11 = vector.shape_cast %10 : vector<16xf32> to vector<16x1xf32>
    %cst_5 = arith.constant 6.400000e+01 : f32
    %12 = vector.broadcast %cst_5 : f32 to vector<16x1xf32>
    %13 = arith.divf %11, %12 : vector<16x1xf32>
    %14 = vector.broadcast %6 : vector<16x1xf32> to vector<16x64xf32>
    %15 = arith.subf %0, %14 : vector<16x64xf32>
    %cst_6 = arith.constant 9.99999974E-6 : f32
    %16 = vector.broadcast %cst_6 : f32 to vector<16x1xf32>
    %17 = arith.addf %13, %16 : vector<16x1xf32>
    %18 = math.rsqrt %17 : vector<16x1xf32>
    %19 = vector.broadcast %18 : vector<16x1xf32> to vector<16x64xf32>
    %20 = arith.mulf %15, %19 : vector<16x64xf32>
    %21 = vector.shape_cast %2 : vector<64xf32> to vector<1x64xf32>
    %22 = vector.broadcast %21 : vector<1x64xf32> to vector<16x64xf32>
    %23 = arith.mulf %20, %22 : vector<16x64xf32>
    %c0_7 = arith.constant 0 : index
    %c0_8 = arith.constant 0 : index
    %24 = vector.load %arg3[%c0_7, %c0_8] : memref<64x64xf32, #tpu.memory_space<vmem>>, vector<64x64xf32>
    %cst_9 = arith.constant dense<0.000000e+00> : vector<16x64xf32>
    %25 = tpu.matmul %23, %24, %cst_9 {dimension_numbers = #tpu.dot_dimension_numbers<[1], [0], [0], [1], [0, 0, 1, 1], [], []>} : vector<16x64xf32>, vector<64x64xf32>, vector<16x64xf32> -> vector<16x64xf32>
    %c0_10 = arith.constant 0 : index
    %c0_11 = arith.constant 0 : index
    %26 = vector.load %arg6[%c0_10, %c0_11] : memref<16x64xf32, #tpu.memory_space<vmem>>, vector<16x64xf32>
    tpu.vector_store %arg6[%c0_10, %c0_11], %25 {strides = array<i32>} : memref<16x64xf32, #tpu.memory_space<vmem>>, vector<16x64xf32>,
    %c0_12 = arith.constant 0 : index
    %c0_13 = arith.constant 0 : index
    %27 = vector.load %arg4[%c0_12, %c0_13] : memref<64x64xf32, #tpu.memory_space<vmem>>, vector<64x64xf32>
    %cst_14 = arith.constant dense<0.000000e+00> : vector<16x64xf32>
    %28 = tpu.matmul %23, %27, %cst_14 {dimension_numbers = #tpu.dot_dimension_numbers<[1], [0], [0], [1], [0, 0, 1, 1], [], []>} : vector<16x64xf32>, vector<64x64xf32>, vector<16x64xf32> -> vector<16x64xf32>
    %c0_15 = arith.constant 0 : index
    %c0_16 = arith.constant 0 : index
    %29 = vector.load %arg7[%c0_15, %c0_16] : memref<16x64xf32, #tpu.memory_space<vmem>>, vector<16x64xf32>
    tpu.vector_store %arg7[%c0_15, %c0_16], %28 {strides = array<i32>} : memref<16x64xf32, #tpu.memory_space<vmem>>, vector<16x64xf32>,
    %c0_17 = arith.constant 0 : index
    %c0_18 = arith.constant 0 : index
    %30 = vector.load %arg5[%c0_17, %c0_18] : memref<64x64xf32, #tpu.memory_space<vmem>>, vector<64x64xf32>
    %cst_19 = arith.constant dense<0.000000e+00> : vector<16x64xf32>
    %31 = tpu.matmul %23, %30, %cst_19 {dimension_numbers = #tpu.dot_dimension_numbers<[1], [0], [0], [1], [0, 0, 1, 1], [], []>} : vector<16x64xf32>, vector<64x64xf32>, vector<16x64xf32> -> vector<16x64xf32>
    %c0_20 = arith.constant 0 : index
    %c0_21 = arith.constant 0 : index
    %32 = vector.load %arg8[%c0_20, %c0_21] : memref<16x64xf32, #tpu.memory_space<vmem>>, vector<16x64xf32>
    tpu.vector_store %arg8[%c0_20, %c0_21], %31 {strides = array<i32>} : memref<16x64xf32, #tpu.memory_space<vmem>>, vector<16x64xf32>,
    return
  }
  func.func @transform_0(%arg0: i32) -> (i32, i32) {
    %c0_i32 = arith.constant 0 : i32
    %c0_i32_0 = arith.constant 0 : i32
    return %arg0, %c0_i32 : i32, i32
  }
  func.func @transform_1(%arg0: i32) -> (i32, i32) {
    %c0_i32 = arith.constant 0 : i32
    %c0_i32_0 = arith.constant 0 : i32
    %c0_i32_1 = arith.constant 0 : i32
    return %c0_i32, %c0_i32_0 : i32, i32
  }
  func.func @transform_2(%arg0: i32) -> (i32, i32) {
    %c0_i32 = arith.constant 0 : i32
    %c0_i32_0 = arith.constant 0 : i32
    %c0_i32_1 = arith.constant 0 : i32
    return %c0_i32, %c0_i32_0 : i32, i32
  }
  func.func @transform_3(%arg0: i32) -> (i32, i32) {
    %c0_i32 = arith.constant 0 : i32
    %c0_i32_0 = arith.constant 0 : i32
    %c0_i32_1 = arith.constant 0 : i32
    return %c0_i32, %c0_i32_0 : i32, i32
  }
  func.func @transform_4(%arg0: i32) -> (i32, i32) {
    %c0_i32 = arith.constant 0 : i32
    %c0_i32_0 = arith.constant 0 : i32
    %c0_i32_1 = arith.constant 0 : i32
    return %c0_i32, %c0_i32_0 : i32, i32
  }
  func.func @transform_5(%arg0: i32) -> (i32, i32) {
    %c0_i32 = arith.constant 0 : i32
    %c0_i32_0 = arith.constant 0 : i32
    return %arg0, %c0_i32 : i32, i32
  }
  func.func @transform_6(%arg0: i32) -> (i32, i32) {
    %c0_i32 = arith.constant 0 : i32
    %c0_i32_0 = arith.constant 0 : i32
    return %arg0, %c0_i32 : i32, i32
  }
  func.func @transform_7(%arg0: i32) -> (i32, i32) {
    %c0_i32 = arith.constant 0 : i32
    %c0_i32_0 = arith.constant 0 : i32
    return %arg0, %c0_i32 : i32, i32
  }
}

</mosaic_0001>

<bundles_post_ra>
// kernel: tpu_custom_call.1
= control target key start
LH: loop header
LB: loop body
LE: loop exit
PB: predicated region body
PF: predicated region fallthrough
CT: control target
= control target key end

     0   :  { %s1712_s0 = inlined_call_operand.hbm [shape: f32[32,64], index: 0, kind: input, shape index: {}]   ;;  %s1713_s1 = inlined_call_operand.vmem [shape: f32[1,64], index: 1, kind: input, shape index: {}]   ;;  %s1714_s2 = inlined_call_operand.hbm [shape: f32[64,64], index: 2, kind: input, shape index: {}]   ;;  %s1715_s3 = inlined_call_operand.hbm [shape: f32[64,64], index: 3, kind: input, shape index: {}]   ;;  %s1716_s4 = inlined_call_operand.hbm [shape: f32[64,64], index: 4, kind: input, shape index: {}]   ;;  %s1717_s5 = inlined_call_operand.hbm [shape: f32[32,64], index: 5, kind: output, shape index: {0}]   ;;  %s1718_s6 = inlined_call_operand.hbm [shape: f32[32,64], index: 6, kind: output, shape index: {1}]   ;;  %s1719_s7 = inlined_call_operand.hbm [shape: f32[32,64], index: 7, kind: output, shape index: {2}]  }
   0x1   :  { %1727 = sst [smem:[#allocation19_spill]] %s1712_s0 }
   0x2   :  { %1728 = sst [smem:[#allocation20_spill]] %s1714_s2 }
   0x3   :  { %13 = vsyncpa [#allocation3], 0 }
   0x4   :  { %15 = vsyncpa [#allocation3 + $0x1], 0 }
   0x5   :  { %16 = vsyncpa [#allocation6], 0 }
   0x6   :  { %17 = vsyncpa [#allocation9], 0 }
   0x7   :  { %18 = vsyncpa [#allocation4], 0 }
   0x8   :  { %20 = vsyncpa [#allocation4 + $0x1], 0 }
   0x9   :  { %21 = vsyncpa [#allocation12], 0 }
   0xa   :  { %23 = vsyncpa [#allocation12 + $0x1], 0  ;;  %s1390_s24 = smov 0   ;;  %s1392_s25 = smov 0  }
   0xb   :  { %s1394_s26 = smov 0   ;;  %s1396_s27 = smov 0  }
   0xc LB: > { %s1411_s28 = sadd.s32 4294967295, %s1337_s27   ;;  %s1721_s29 = sadd.s32 4294967294, %s1337_s27   ;;  %s1337_s27 = sphi %s1396_s27, %s1752_s27   ;;  %s1333_s26 = sphi %s1394_s26, %s1751_s26   ;;  %s1329_s25 = sphi %s1392_s25, %s1750_s25   ;;  %s1325_s24 = sphi %s1390_s24, %s1749_s24  }
   0xd   : > { %p49_p0 = scmp.ne.s32.totalorder %s1329_s25, %s1325_s24  ;;  %p1720_p1 = scmp.eq.s32.totalorder %s1411_s28, 0 }
   0xe   : > { %p157_p2 = scmp.eq.s32.totalorder %s1411_s28, 1  ;;  %p163_p3 = scmp.eq.s32.totalorder %s1721_s29, 1 }
   0xf   : > { %p1422_p4 = por %p1720_p1, %p49_p0  ;;  %p883_p5 = scmp.ge.s32.totalorder %s1337_s27, 1 }
  0x10   : > { %p1427_p6 = por %p163_p3, %p49_p0  ;;  %p222_p7 = scmp.lt.s32.totalorder %s1337_s27, 3 }
  0x11   : > { %s1729_s30 = scalar_select %p1422_p4, 1, 0 }
  0x12   : > { %s1730_s8 = scalar_select %p1427_p6, 1, 0 }
  0x13   : > { %p1432_p8 = pnand %p883_p5, %p222_p7  ;;  %s1339_s10 = smov [#allocation5]  }
  0x14   : > { %s237_s11 = sshll.u32 %s1339_s10, 4  ;;  %s1340_s13 = smov [#allocation7]   ;;  %s238_s11 = int_to_ptr.vmem [resolvable:$true] %s237_s11 }
  0x15   : > { %s1731_s9 = scalar_select %p1432_p8, 1, 0 }
  0x16   : > { %p1028_p9 = pneg %p1432_p8  ;;  %s250_s14 = sshll.u32 %s1340_s13, 4  ;;  %s251_s14 = int_to_ptr.vmem [resolvable:$true] %s250_s14 }
  0x17   : > { %s1341_s15 = smov [#allocation8]   ;;  %s1114_s17 = scalar_lea.vmem %s238_s11, 1024 }
  0x18   : > { %p1441_p11 = pnand %p1028_p9, %p1720_p1  ;;  %s263_s16 = sshll.u32 %s1341_s15, 4  ;;  %s264_s16 = int_to_ptr.vmem [resolvable:$true] %s263_s16 }
  0x19   : > { %p1115_p13 = scmp.ne.s32.totalorder %s238_s11, %s1114_s17  ;;  %p1122_p5 = scmp.lt.s32.totalorder %s238_s11, %s238_s11 }
  0x1a   : > { %p1105_p12 = pneg %p1441_p11  ;;  %p1123_p7 = scmp.lt.s32.totalorder %s1114_s17, %s1114_s17 }
  0x1c   : > { %p1117_p0 = pnand %p1115_p13, %p1105_p12  ;;  %p1124_p9 = por %p1123_p7, %p1122_p5 }
  0x1e   : > { %p1118_p3 = pneg %p1117_p0 }
  0x20   : > { %p1125_p10 = pnand %p1124_p9, %p1118_p3 }
  0x22   : > { %1128 = shalt.err (!%p1125_p10)
}
  0x23   : > { %s1722_s18 = smov 128   ;;  %s1723_s19 = smov 8  }
  0x24   : > { %s1733_s2 = sld [smem:[#allocation20_spill]]  ;;  %s1140_s22 = scalar_lea.vmem %s251_s14, 1024 }
  0x25   : > { %p1141_p13 = scmp.ne.s32.totalorder %s251_s14, %s1140_s22  ;;  %p1148_p3 = scmp.lt.s32.totalorder %s251_s14, %s251_s14 }
  0x26   : > { %p1149_p10 = scmp.lt.s32.totalorder %s1140_s22, %s1140_s22 }
  0x27   : > { %p1143_p0 = pnand %p1141_p13, %p1105_p12 }
  0x28   : > { %p1150_p7 = por %p1149_p10, %p1148_p3 }
  0x29   : > { %p1144_p5 = pneg %p1143_p0 }
  0x2a   : > { %1031 = dma.hbm_to_vmem [thread:$0]  (!%p1441_p11), %s1733_s2, 1024, %s238_s11, [#allocation6], %s1722_s18, %s1722_s18, %s1723_s19  }
  0x2b   : > { %p1151_p9 = pnand %p1150_p7, %p1144_p5 }
  0x2d   : > { %1154 = shalt.err (!%p1151_p9)
}
  0x2e   : > { %1034 = dma.hbm_to_vmem [thread:$0]  (!%p1441_p11), %s1715_s3, 1024, %s251_s14, [#allocation6], %s1722_s18, %s1722_s18, %s1723_s19  }
  0x2f   : > { %s1166_s11 = scalar_lea.vmem %s264_s16, 1024  ;;  %p1174_p3 = scmp.lt.s32.totalorder %s264_s16, %s264_s16 }
  0x30   : > { %p1167_p1 = scmp.ne.s32.totalorder %s264_s16, %s1166_s11  ;;  %p1175_p5 = scmp.lt.s32.totalorder %s1166_s11, %s1166_s11 }
  0x32   : > { %p1169_p13 = pnand %p1167_p1, %p1105_p12  ;;  %p1176_p10 = por %p1175_p5, %p1174_p3 }
  0x34   : > { %p1170_p0 = pneg %p1169_p13 }
  0x36   : > { %p1177_p7 = pnand %p1176_p10, %p1170_p0 }
  0x38   : > { %1180 = shalt.err (!%p1177_p7)
}
  0x39   : > { %1037 = dma.hbm_to_vmem [thread:$0]  (!%p1441_p11), %s1716_s4, 1024, %s264_s16, [#allocation9], %s1722_s18, %s1722_s18, %s1723_s19  }
  0x3a   : > { %s1481_s14 = sadd.s32 1, %s1337_s27   ;;  %s36_s17 = sadd.s32 1, %s1333_s26 }
  0x3b   : > { %s33_s12 = ssub.s32 %s1337_s27, %s1481_s14  ;;  %p43_p12 = scmp.ne.s32.totalorder %s1333_s26, %s1329_s25 }
  0x3c   : > { %p34_p1 = scmp.eq.s32.totalorder %s33_s12, 0  ;;  %p44_p9 = scmp.eq.s32.totalorder %s1337_s27, 0 }
  0x3d   : > { %p1055_p13 = scmp.lt.s32.totalorder %s1337_s27, 2  ;;  %p1495_p3 = por %p157_p2, %p43_p12 }
  0x3e   : > { %s1491_s20 = scalar_select %p34_p1, %s1333_s26, %s36_s17  }
  0x3f   : > { %p45_p0 = por %p44_p9, %p43_p12  ;;  %s277_s22 = sand.u32 1, %s1333_s26  }
  0x40   : > { %s1734_s21 = scalar_select %p1495_p3, 1, 0 }
  0x41   : > { %s917_s23 = sshll.u32 %s1337_s27, 8  ;;  %s888_s16 = sshll.u32 %s277_s22, 4 }
  0x42   : > { %s1735_s0 = sld [smem:[#allocation19_spill]]  ;;  %s281_s15 = scalar_lea.vmem [#allocation2], %s888_s16 }
  0x43   : > { %s288_s12 = sshll.u32 %s281_s15, 4  ;;  %p1506_p11 = pnand %p1055_p13, %p45_p0  ;;  %s1510_s12 = int_to_ptr.vmem [resolvable:$true] %s288_s12 }
  0x44   : > { %s1512_s29 = scalar_lea.sflag [#allocation3], %s277_s22 }
  0x45   : > { %p1183_p5 = pneg %p1506_p11 }
  0x48   : > { %s1504_s13 = scalar_lea.hbm %s1735_s0, %s917_s23  ;;  %s1186_s16 = scalar_lea.hbm %s1735_s0, 512 }
  0x49   : > { %s1181_s18 = scalar_lea.hbm %s1504_s13, 256  ;;  %p1187_p1 = scmp.lt.s32.totalorder %s1504_s13, %s1735_s0 }
  0x4a   : > { %p1182_p2 = scmp.ne.s32.totalorder %s1504_s13, %s1181_s18  ;;  %p1188_p12 = scmp.lt.s32.totalorder %s1186_s16, %s1181_s18 }
  0x4c   : > { %p1184_p10 = pnand %p1183_p5, %p1182_p2  ;;  %p1189_p9 = por %p1188_p12, %p1187_p1 }
  0x4e   : > { %p1185_p7 = pneg %p1184_p10 }
  0x50   : > { %p1190_p13 = pnand %p1189_p9, %p1185_p7 }
  0x52   : > { %1193 = shalt.err (!%p1190_p13)
}
  0x53   : > { %s1194_s22 = scalar_lea.vmem %s1510_s12, 256  ;;  %s1344_s19 = smov [#allocation2]  }
  0x54   : > { %p1195_p0 = scmp.ne.s32.totalorder %s1510_s12, %s1194_s22  ;;  %s1199_s2 = sshll.u32 %s1344_s19, 4  ;;  %s1200_s2 = int_to_ptr.vmem [resolvable:$false] %s1199_s2 }
  0x55   : > { %s1201_s23 = scalar_lea.vmem %s1200_s2, 512  ;;  %p1202_p10 = scmp.lt.s32.totalorder %s1510_s12, %s1200_s2 }
  0x56   : > { %p1197_p6 = pnand %p1195_p0, %p1183_p5  ;;  %p1203_p3 = scmp.lt.s32.totalorder %s1201_s23, %s1194_s22 }
  0x58   : > { %p1198_p2 = pneg %p1197_p6  ;;  %p1204_p4 = por %p1203_p3, %p1202_p10 }
  0x5a   : > { %p1205_p8 = pnand %p1204_p4, %p1198_p2 }
  0x5c   : > { %1208 = shalt.err (!%p1205_p8)
}
  0x5d   : > { %s1737_s18 = smov 8   ;;  %s1738_s10 = smov 128  }
  0x5e   : > { %1041 = dma.hbm_to_vmem [thread:$0]  (!%p1506_p11), %s1504_s13, 256, %s1510_s12, %s1512_s29, %s1738_s10, %s1738_s10, %s1737_s18  }
  0x5f   : > { %p1739_p6 = scmp.ne.s32.totalorder %s1731_s9, 0 }
  0x60   : > { %s1539_s19 = sand.u32 (!%p1739_p6), 1, %s1329_s25   ;;  %p1740_p4 = scmp.ne.s32.totalorder (!%p1739_p6), %s1729_s30, 0 }
  0x61   : > { %300 = sbr.rel (%p1739_p6) target bundleno = 675 (0x2a3), region = 40  ;;  %s1542_s2 = sshll.u32 (!%p1739_p6), %s1539_s19, 4 }
  0x62   : > { %s303_s17 = scalar_lea.sflag (!%p1739_p6), [#allocation3], %s1539_s19  ;;  %s306_s16 = scalar_lea.vmem (!%p1739_p6), [#allocation2], %s1542_s2 }
  0x66   : > { %1304 = dma.done.wait (%p1740_p4), %s303_s17, 256  }
  0x67   : > { %1306 = vsyncadd (%p1740_p4), %s303_s17, 4294967040  ;;  %p1741_p8 = scmp.eq.s32.totalorder %s1411_s28, 0 }
  0x69   : > { %1308 = dma.done.wait (%p1741_p8), [#allocation6], 2048   ;;  %p1742_p3 = pmov %p1741_p8 }
  0x6b   : > { %1310 = vsyncadd (%p1742_p3), [#allocation6], 4294965248  ;;  %p1743_p11 = pmov %p1742_p3 }
  0x6c   : > { %p1744_p5 = pmov %p1742_p3 }
  0x6d   : > { %1312 = dma.done.wait (%p1743_p11), [#allocation9], 1024  }
  0x6e   : > { %1314 = vsyncadd (%p1744_p5), [#allocation9], 4294966272  ;;  %vm366_vm0 = vcmask 523264   ;;  %v363_v0 = vld [vmem:[%s306_s16] sm:$0xff]  ;;  %v364_v1 = vld [vmem:[%s306_s16 + $0x8] sm:$0xff]  ;;  %s344_s9 = scalar_lea.vmem [#allocation10], %s1542_s2 }
  0x6f   : > { %v367_v2 = vsel %vm366_vm0, %v363_v0, 0.0  ;;  %v370_v3 = vsel %vm366_vm0, %v364_v1, 0.0  ;;  %v409_v14 = vld [vmem:[#allocation5 + $0x38] sm:$0xff]  ;;  %v408_v16 = vld [vmem:[#allocation5 + $0x30] sm:$0xff]  ;;  %v407_v18 = vld [vmem:[#allocation5 + $0x28] sm:$0xff]  ;;  %s687_s13 = sshll.u32 %s344_s9, 4  ;;  %s1587_s13 = int_to_ptr.vmem [resolvable:$true] %s687_s13 }
  0x70   : > { %368 = vadd.xlane.f32.xlu0 %v367_v2  ;;  %v500_v15 = vld [vmem:[#allocation7 + $0x38] sm:$0xff]  ;;  %951 = vmatprep.subr.mxu0 %v409_v14  ;;  %v499_v17 = vld [vmem:[#allocation7 + $0x30] sm:$0xff]  ;;  %v498_v19 = vld [vmem:[#allocation7 + $0x28] sm:$0xff]  ;;  %s351_s12 = scalar_lea.vmem [#allocation11], %s1542_s2  ;;  %s668_s15 = sand.u32 1, %s1411_s28  }
  0x71   : > { %970 = vmatprep.subr.mxu1 %v500_v15  ;;  %952 = vmatpush3.msra.mxu0 %v409_v14  ;;  %v406_v20 = vld [vmem:[#allocation5 + $0x20] sm:$0xff]  ;;  %v405_v22 = vld [vmem:[#allocation5 + $0x18] sm:$0xff]  ;;  %v404_v24 = vld [vmem:[#allocation5 + $0x10] sm:$0xff]  ;;  %s703_s11 = sshll.u32 %s351_s12, 4  ;;  %s1585_s22 = sshll.u32 %s1411_s28, 8  ;;  %s1589_s11 = int_to_ptr.vmem [resolvable:$true] %s703_s11 }
  0x72   : > { %971 = vmatpush3.msra.mxu1 %v500_v15  ;;  %953 = vmatprep.subr.mxu0 %v408_v16  ;;  %v497_v21 = vld [vmem:[#allocation7 + $0x20] sm:$0xff]  ;;  %v496_v23 = vld [vmem:[#allocation7 + $0x18] sm:$0xff]  ;;  %v495_v25 = vld [vmem:[#allocation7 + $0x10] sm:$0xff]  ;;  %s1597_s28 = scalar_lea.hbm %s1718_s6, %s1585_s22  ;;  %s1603_s16 = scalar_lea.hbm %s1717_s5, %s1585_s22 }
  0x73   : > { %972 = vmatprep.subr.mxu1 %v499_v17  ;;  %954 = vmatpush3.msra.mxu0 %v408_v16  ;;  %v403_v26 = vld [vmem:[#allocation5 + $0x8] sm:$0xff]  ;;  %v402_v28 = vld [vmem:[#allocation5] sm:$0xff]  ;;  %v585_v30 = vld [vmem:[#allocation8 + $0x38] sm:$0xff]  ;;  %s1607_s29 = scalar_lea.sflag [#allocation12], %s668_s15  ;;  %s1209_s30 = scalar_lea.vmem %s1589_s11, 256 }
  0x74   : > { %371 = vadd.xlane.f32.xlu0 %v370_v3  ;;  %973 = vmatpush3.msra.mxu1 %v499_v17  ;;  %v494_v27 = vld [vmem:[#allocation7 + $0x8] sm:$0xff]  ;;  %v493_v29 = vld [vmem:[#allocation7] sm:$0xff]  ;;  %v584_v44 = vld [vmem:[#allocation8 + $0x30] sm:$0xff]  ;;  %p1210_p7 = scmp.ne.s32.totalorder %s1589_s11, %s1209_s30  ;;  %p1745_p1 = scmp.ne.s32.totalorder %s1734_s21, 0 }
  0x75   : > { %955 = vmatprep.subr.mxu0 %v407_v18  ;;  %974 = vmatprep.subr.mxu1 %v498_v19  ;;  %v899_v38 = vld [vmem:[%s1713_s1] ss:$0 sm:$0xff]  ;;  %v583_v45 = vld [vmem:[#allocation8 + $0x28] sm:$0xff]  ;;  %v581_v47 = vld [vmem:[#allocation8 + $0x18] sm:$0xff]  ;;  %s1345_s23 = smov [#allocation11]  }
  0x76   : > { %956 = vmatpush3.msra.mxu0 %v407_v18  ;;  %975 = vmatpush3.msra.mxu1 %v498_v19  ;;  %v582_v46 = vld [vmem:[#allocation8 + $0x20] sm:$0xff]  ;;  %v580_v48 = vld [vmem:[#allocation8 + $0x10] sm:$0xff]  ;;  %v579_v49 = vld [vmem:[#allocation8 + $0x8] sm:$0xff]  ;;  %p1211_p12 = pnand %p1210_p7, %p1745_p1  ;;  %s1213_s18 = sshll.u32 %s1345_s23, 4  ;;  %s1214_s18 = int_to_ptr.vmem [resolvable:$false] %s1213_s18 }
  0x77   : > { %957 = vmatprep.subr.mxu0 %v406_v20  ;;  %976 = vmatprep.subr.mxu1 %v497_v21  ;;  %v578_v50 = vld [vmem:[#allocation8] sm:$0xff]  ;;  %s1215_s0 = scalar_lea.vmem %s1214_s18, 512  ;;  %p1216_p13 = scmp.lt.s32.totalorder %s1589_s11, %s1214_s18 }
  0x78   : > { %958 = vmatpush3.msra.mxu0 %v406_v20  ;;  %977 = vmatpush3.msra.mxu1 %v497_v21  ;;  %p1212_p9 = pneg %p1211_p12  ;;  %p1217_p0 = scmp.lt.s32.totalorder %s1215_s0, %s1209_s30 }
  0x79   : > { %959 = vmatprep.subr.mxu0 %v405_v22  ;;  %978 = vmatprep.subr.mxu1 %v496_v23 }
  0x7a   : > { %960 = vmatpush3.msra.mxu0 %v405_v22  ;;  %979 = vmatpush3.msra.mxu1 %v496_v23  ;;  %p1218_p2 = por %p1217_p0, %p1216_p13 }
  0x7b   : > { %961 = vmatprep.subr.mxu0 %v404_v24  ;;  %980 = vmatprep.subr.mxu1 %v495_v25 }
  0x7c   : > { %962 = vmatpush3.msra.mxu0 %v404_v24  ;;  %981 = vmatpush3.msra.mxu1 %v495_v25  ;;  %p1219_p10 = pnand %p1218_p2, %p1212_p9 }
  0x7d   : > { %963 = vmatprep.subr.mxu0 %v403_v26  ;;  %982 = vmatprep.subr.mxu1 %v494_v27 }
  0x7e   : > { %964 = vmatpush3.msra.mxu0 %v403_v26  ;;  %983 = vmatpush3.msra.mxu1 %v494_v27 }
  0x7f   : > { %965 = vmatprep.subr.mxu0 %v402_v28  ;;  %984 = vmatprep.subr.mxu1 %v493_v29 }
  0x80   : > { %966 = vmatpush3.msra.mxu0 %v402_v28  ;;  %985 = vmatpush3.msra.mxu1 %v493_v29 }
  0x81   : > { %989 = vmatprep.subr.mxu0 %v585_v30 }
  0xf9   : > { %v369_v4 = vpop.xlane.xlu0 %368 }
  0xfa   : > { %v374_v5 = vmul.f32 0.015625, %v369_v4 }
  0xfc   : > { %v1560_v6 = vsub.f32 %v363_v0, %v374_v5 }
  0xfd   : > { %v372_v7 = vpop.xlane.xlu0 %371 }
  0xfe   : > { %v375_v8 = vmul.f32 0.015625, %v372_v7  ;;  %v378_v9 = vmul.f32 %v1560_v6, %v1560_v6 }
 0x100   : > { %v1564_v10 = vsub.f32 %v364_v1, %v375_v8  ;;  %v380_v11 = vsel %vm366_vm0, %v378_v9, 0.0 }
 0x101   : > { %381 = vadd.xlane.f32.xlu1 %v380_v11 }
 0x102   : > { %v379_v12 = vmul.f32 %v1564_v10, %v1564_v10 }
 0x104   : > { %v383_v13 = vsel %vm366_vm0, %v379_v12, 0.0 }
 0x105   : > { %384 = vadd.xlane.f32.xlu1 %v383_v13 }
 0x18a   : > { %v382_v31 = vpop.xlane.xlu1 %381 }
 0x18b   : > { %v386_v32 = vmul.f32 0.015625, %v382_v31 }
 0x18d   : > { %v388_v33 = vadd.f32 1e-05, %v386_v32 }
 0x18e   : > { %v385_v34 = vpop.xlane.xlu1 %384 }
 0x18f   : > { %1099 = vrsqrt.f32 %v388_v33  ;;  %v387_v35 = vmul.f32 0.015625, %v385_v34 }
 0x191   : > { %v389_v36 = vadd.f32 1e-05, %v387_v35 }
 0x193   : > { %1101 = vrsqrt.f32 %v389_v36 }
 0x19c   : > { %v1100_v37 = vpop.eup %1099 }
 0x19d   : > { %v392_v39 = vmul.f32 %v1100_v37, %v1560_v6 }
 0x19f   : > { %v400_v40 = vmul.f32 %v899_v38, %v392_v39 }
 0x1a0   : > { %v1102_v41 = vpop.eup %1101 }
 0x1a1   : > { %v393_v42 = vmul.f32 %v1102_v41, %v1564_v10  ;;  %967 = vmatprep.mubr.msk.f32.mxu0 %vm366_vm0, %v400_v40  ;;  %986 = vmatprep.mubr.msk.f32.mxu1 %vm366_vm0, %v400_v40 }
 0x1a3   : > { %v401_v43 = vmul.f32 %v899_v38, %v393_v42 }
 0x1a5   : > { %968 = vmatmul.mubr.msk.f32.vlgmr.msra.gmra.mxu0 %vm366_vm0, %v401_v43  ;;  %987 = vmatmul.mubr.msk.f32.vlgmr.msra.gmra.mxu1 %vm366_vm0, %v401_v43 }
 0x1a6   : > { %990 = vmatpush3.msra.mxu0 %v585_v30  ;;  %1005 = vmatprep.mubr.msk.f32.mxu0 %vm366_vm0, %v400_v40 }
 0x1a7   : > { %991 = vmatprep.subr.mxu0 %v584_v44 }
 0x1a8   : > { %992 = vmatpush3.msra.mxu0 %v584_v44 }
 0x1a9   : > { %993 = vmatprep.subr.mxu0 %v583_v45 }
 0x1aa   : > { %994 = vmatpush3.msra.mxu0 %v583_v45 }
 0x1ab   : > { %995 = vmatprep.subr.mxu0 %v582_v46 }
 0x1ac   : > { %996 = vmatpush3.msra.mxu0 %v582_v46 }
 0x1ad   : > { %997 = vmatprep.subr.mxu0 %v581_v47 }
 0x1ae   : > { %998 = vmatpush3.msra.mxu0 %v581_v47 }
 0x1af   : > { %999 = vmatprep.subr.mxu0 %v580_v48 }
 0x1b0   : > { %1000 = vmatpush3.msra.mxu0 %v580_v48 }
 0x1b1   : > { %1001 = vmatprep.subr.mxu0 %v579_v49 }
 0x1b2   : > { %1002 = vmatpush3.msra.mxu0 %v579_v49 }
 0x1b3   : > { %1003 = vmatprep.subr.mxu0 %v578_v50 }
 0x1b4   : > { %1004 = vmatpush3.msra.mxu0 %v578_v50 }
 0x1b5   : > { %1006 = vmatmul.mubr.msk.f32.vlgmr.msra.gmra.mxu0 %vm366_vm0, %v401_v43 }
 0x265   : > { %v969_v51 = vpop.f32.mrf.mxu0  ;;  %v988_v52 = vpop.f32.mrf.mxu1 }
 0x266   : > { %492 = vst.msk [vmem:[%s344_s9 + $0x8] sm:$0xff] %vm366_vm0, %v969_v51  ;;  %577 = vst.msk [vmem:[%s351_s12 + $0x8] sm:$0xff] %vm366_vm0, %v988_v52 }
 0x267   : > { %v482_v53 = vpop.f32.mrf.mxu0  ;;  %v567_v54 = vpop.f32.mrf.mxu1 }
 0x268   : > { %491 = vst.msk [vmem:[%s344_s9] sm:$0xff] %vm366_vm0, %v482_v53  ;;  %576 = vst.msk [vmem:[%s351_s12] sm:$0xff] %vm366_vm0, %v567_v54 }
 0x269   : > { %1222 = shalt.err (!%p1219_p10)
}
 0x26a   : > { %s1223_s9 = scalar_lea.hbm %s1597_s28, 256  ;;  %s1227_s10 = scalar_lea.hbm %s1718_s6, 512 }
 0x26b   : > { %p1224_p6 = scmp.ne.s32.totalorder %s1597_s28, %s1223_s9  ;;  %p1228_p3 = scmp.lt.s32.totalorder %s1597_s28, %s1718_s6 }
 0x26c   : > { %p1229_p11 = scmp.lt.s32.totalorder %s1227_s10, %s1223_s9 }
 0x26d   : > { %p1225_p4 = pnand %p1224_p6, %p1745_p1 }
 0x26e   : > { %p1230_p5 = por %p1229_p11, %p1228_p3 }
 0x26f   : > { %p1226_p8 = pneg %p1225_p4 }
 0x271   : > { %p1231_p7 = pnand %p1230_p5, %p1226_p8 }
 0x273   : > { %1234 = shalt.err (!%p1231_p7)
}
 0x274   : > { %s1346_s0 = smov 128   ;;  %s1347_s30 = smov 8  }
 0x275   : > { %1023 = dma.vmem_to_hbm [thread:$0]  (%p1745_p1), %s1589_s11, 256, %s1597_s28, %s1607_s29, %s1346_s0, %s1346_s0, %s1347_s30  }
 0x276   : > { %s664_s18 = scalar_lea.sflag [#allocation4], %s1539_s19  ;;  %s1235_s9 = scalar_lea.vmem %s1587_s13, 256 }
 0x277   : > { %p1236_p12 = scmp.ne.s32.totalorder %s1587_s13, %s1235_s9  ;;  %s1348_s12 = smov [#allocation10]  }
 0x278   : > { %s1239_s15 = sshll.u32 %s1348_s12, 4  ;;  %s1240_s15 = int_to_ptr.vmem [resolvable:$false] %s1239_s15 }
 0x279   : > { %p1237_p9 = pnand %p1236_p12, %p1745_p1  ;;  %s1241_s10 = scalar_lea.vmem %s1240_s15, 512 }
 0x27a   : > { %p1242_p0 = scmp.lt.s32.totalorder %s1587_s13, %s1240_s15  ;;  %p1243_p2 = scmp.lt.s32.totalorder %s1241_s10, %s1235_s9 }
 0x27b   : > { %p1238_p13 = pneg %p1237_p9 }
 0x27c   : > { %p1244_p10 = por %p1243_p2, %p1242_p0 }
 0x27e   : > { %p1245_p6 = pnand %p1244_p10, %p1238_p13 }
 0x280   : > { %1248 = shalt.err (!%p1245_p6)
}
 0x281   : > { %s1249_s11 = scalar_lea.hbm %s1603_s16, 256  ;;  %s1253_s17 = scalar_lea.hbm %s1717_s5, 512 }
 0x282   : > { %p1250_p4 = scmp.ne.s32.totalorder %s1603_s16, %s1249_s11  ;;  %p1254_p11 = scmp.lt.s32.totalorder %s1603_s16, %s1717_s5 }
 0x283   : > { %p1255_p5 = scmp.lt.s32.totalorder %s1253_s17, %s1249_s11 }
 0x284   : > { %p1251_p8 = pnand %p1250_p4, %p1745_p1 }
 0x285   : > { %p1256_p7 = por %p1255_p5, %p1254_p11 }
 0x286   : > { %p1252_p3 = pneg %p1251_p8 }
 0x288   : > { %p1257_p12 = pnand %p1256_p7, %p1252_p3 }
 0x28a   : > { %1260 = shalt.err (!%p1257_p12)
}
 0x28b   : > { %1022 = dma.vmem_to_hbm [thread:$0]  (%p1745_p1), %s1587_s13, 256, %s1603_s16, %s664_s18, %s1346_s0, %s1346_s0, %s1347_s30   ;;  %v1007_v55 = vpop.f32.mrf.mxu0 }
 0x28c   : > { %s358_s9 = scalar_lea.vmem [#allocation13], %s1542_s2  ;;  %s1665_s19 = scalar_lea.hbm %s1719_s7, %s1585_s22 }
 0x28d   : > { %s719_s15 = sshll.u32 %s358_s9, 4  ;;  %662 = vst.msk [vmem:[%s358_s9 + $0x8] sm:$0xff] %vm366_vm0, %v1007_v55  ;;  %v652_v56 = vpop.f32.mrf.mxu0  ;;  %s1349_s2 = smov [#allocation13]   ;;  %s1659_s15 = int_to_ptr.vmem [resolvable:$true] %s719_s15 }
 0x28e   : > { %661 = vst.msk [vmem:[%s358_s9] sm:$0xff] %vm366_vm0, %v652_v56  ;;  %s1261_s28 = scalar_lea.vmem %s1659_s15, 256  ;;  %s1265_s13 = sshll.u32 %s1349_s2, 4  ;;  %s1266_s13 = int_to_ptr.vmem [resolvable:$false] %s1265_s13 }
 0x28f   : > { %p1262_p9 = scmp.ne.s32.totalorder %s1659_s15, %s1261_s28  ;;  %s1267_s16 = scalar_lea.vmem %s1266_s13, 512 }
 0x290   : > { %p1268_p2 = scmp.lt.s32.totalorder %s1659_s15, %s1266_s13  ;;  %p1269_p10 = scmp.lt.s32.totalorder %s1267_s16, %s1261_s28 }
 0x291   : > { %p1263_p13 = pnand %p1262_p9, %p1745_p1 }
 0x292   : > { %p1270_p6 = por %p1269_p10, %p1268_p2 }
 0x293   : > { %p1264_p0 = pneg %p1263_p13 }
 0x295   : > { %p1271_p4 = pnand %p1270_p6, %p1264_p0 }
 0x297   : > { %1274 = shalt.err (!%p1271_p4)
}
 0x298   : > { %s1275_s22 = scalar_lea.hbm %s1665_s19, 256  ;;  %s1279_s23 = scalar_lea.hbm %s1719_s7, 512 }
 0x299   : > { %p1276_p8 = scmp.ne.s32.totalorder %s1665_s19, %s1275_s22  ;;  %p1280_p5 = scmp.lt.s32.totalorder %s1665_s19, %s1719_s7 }
 0x29a   : > { %p1281_p7 = scmp.lt.s32.totalorder %s1279_s23, %s1275_s22 }
 0x29b   : > { %p1277_p3 = pnand %p1276_p8, %p1745_p1 }
 0x29c   : > { %p1282_p12 = por %p1281_p7, %p1280_p5 }
 0x29d   : > { %p1278_p11 = pneg %p1277_p3 }
 0x29f   : > { %p1283_p9 = pnand %p1282_p12, %p1278_p11 }
 0x2a1   : > { %1286 = shalt.err (!%p1283_p9)
}
 0x2a2   : > { %1024 = dma.vmem_to_hbm [thread:$0]  (%p1745_p1), %s1659_s15, 256, %s1665_s19, %s1607_s29, %s1346_s0, %s1346_s0, %s1347_s30  }
 0x2a3 PF: > { %s734_s10 = sand.u32 1, %s1325_s24   ;;  %p1746_p13 = scmp.ne.s32.totalorder %s1730_s8, 0 }
 0x2a4   : > { %p1747_p0 = scmp.ge.s32.totalorder %s1337_s27, 2  ;;  %s735_s11 = scalar_lea.sflag [#allocation4], %s734_s10 }
 0x2a6   : > { %p1043_p2 = pnand %p1747_p0, %p1746_p13 }
 0x2a8   : > { %p1044_p10 = pneg %p1043_p2 }
 0x2aa   : > { %1316 = dma.done.wait (%p1044_p10), %s735_s11, 256  }
 0x2ab   : > { %1318 = vsyncadd (%p1044_p10), %s735_s11, 4294967040  ;;  %s1748_s21 = sadd.s32 4294967294, %s1337_s27  }
 0x2ac   : > { %s743_s28 = sand.u32 1, %s1748_s21  }
 0x2ad   : > { %s744_s2 = scalar_lea.sflag [#allocation12], %s743_s28 }
 0x2ae   : > { %1320 = dma.done.wait (%p1044_p10), %s744_s2, 512  }
 0x2af   : > { %1322 = vsyncadd (%p1044_p10), %s744_s2, 4294966784  ;;  %p26_p1 = scmp.ge.s32.totalorder %s1481_s14, 4   ;;  %s1749_s24 = smov %s1329_s25 }
 0x2b0   : > { %s1750_s25 = smov %s1333_s26  ;;  %s1751_s26 = smov %s1491_s20 }
 0x2b1   : > { %s1752_s27 = smov %s1481_s14  ;;  %28 = sbr.rel (!%p26_p1) target bundleno = 12 (0xc), region = 129 }
 0x2b6   :  { %758 = vsyncpa [#allocation3], 1 }
 0x2b7   :  { %760 = vsyncpa [#allocation3 + $0x1], 1 }
 0x2b8   :  { %761 = vsyncpa [#allocation6], 1 }
 0x2b9   :  { %762 = vsyncpa [#allocation9], 1 }
 0x2ba   :  { %763 = vsyncpa [#allocation4], 1 }
 0x2bb   :  { %765 = vsyncpa [#allocation4 + $0x1], 1 }
 0x2bc   :  { %766 = vsyncpa [#allocation12], 1 }
 0x2bd   :  { %768 = vsyncpa [#allocation12 + $0x1], 1 }

// kernel: tpu_custom_call.1
= control target key start
LH: loop header
LB: loop body
LE: loop exit
PB: predicated region body
PF: predicated region fallthrough
CT: control target
= control target key end

     0   :  { %s1712_s0 = inlined_call_operand.hbm [shape: f32[32,64], index: 0, kind: input, shape index: {}]   ;;  %s1713_s1 = inlined_call_operand.vmem [shape: f32[1,64], index: 1, kind: input, shape index: {}]   ;;  %s1714_s2 = inlined_call_operand.hbm [shape: f32[64,64], index: 2, kind: input, shape index: {}]   ;;  %s1715_s3 = inlined_call_operand.hbm [shape: f32[64,64], index: 3, kind: input, shape index: {}]   ;;  %s1716_s4 = inlined_call_operand.hbm [shape: f32[64,64], index: 4, kind: input, shape index: {}]   ;;  %s1717_s5 = inlined_call_operand.hbm [shape: f32[32,64], index: 5, kind: output, shape index: {0}]   ;;  %s1718_s6 = inlined_call_operand.hbm [shape: f32[32,64], index: 6, kind: output, shape index: {1}]   ;;  %s1719_s7 = inlined_call_operand.hbm [shape: f32[32,64], index: 7, kind: output, shape index: {2}]  }
   0x1   :  { %1727 = sst [smem:[#allocation19_spill]] %s1712_s0 }
   0x2   :  { %1728 = sst [smem:[#allocation20_spill]] %s1714_s2 }
   0x3   :  { %13 = vsyncpa [#allocation3], 0 }
   0x4   :  { %15 = vsyncpa [#allocation3 + $0x1], 0 }
   0x5   :  { %16 = vsyncpa [#allocation6], 0 }
   0x6   :  { %17 = vsyncpa [#allocation9], 0 }
   0x7   :  { %18 = vsyncpa [#allocation4], 0 }
   0x8   :  { %20 = vsyncpa [#allocation4 + $0x1], 0 }
   0x9   :  { %21 = vsyncpa [#allocation12], 0 }
   0xa   :  { %23 = vsyncpa [#allocation12 + $0x1], 0  ;;  %s1390_s24 = smov 0   ;;  %s1392_s25 = smov 0  }
   0xb   :  { %s1394_s26 = smov 0   ;;  %s1396_s27 = smov 0  }
   0xc LB: > { %s1411_s28 = sadd.s32 4294967295, %s1337_s27   ;;  %s1721_s29 = sadd.s32 4294967294, %s1337_s27   ;;  %s1337_s27 = sphi %s1396_s27, %s1752_s27   ;;  %s1333_s26 = sphi %s1394_s26, %s1751_s26   ;;  %s1329_s25 = sphi %s1392_s25, %s1750_s25   ;;  %s1325_s24 = sphi %s1390_s24, %s1749_s24  }
   0xd   : > { %p49_p0 = scmp.ne.s32.totalorder %s1329_s25, %s1325_s24  ;;  %p1720_p1 = scmp.eq.s32.totalorder %s1411_s28, 0 }
   0xe   : > { %p157_p2 = scmp.eq.s32.totalorder %s1411_s28, 1  ;;  %p163_p3 = scmp.eq.s32.totalorder %s1721_s29, 1 }
   0xf   : > { %p1422_p4 = por %p1720_p1, %p49_p0  ;;  %p883_p5 = scmp.ge.s32.totalorder %s1337_s27, 1 }
  0x10   : > { %p1427_p6 = por %p163_p3, %p49_p0  ;;  %p222_p7 = scmp.lt.s32.totalorder %s1337_s27, 3 }
  0x11   : > { %s1729_s30 = scalar_select %p1422_p4, 1, 0 }
  0x12   : > { %s1730_s8 = scalar_select %p1427_p6, 1, 0 }
  0x13   : > { %p1432_p8 = pnand %p883_p5, %p222_p7  ;;  %s1339_s10 = smov [#allocation5]  }
  0x14   : > { %s237_s11 = sshll.u32 %s1339_s10, 4  ;;  %s1340_s13 = smov [#allocation7]   ;;  %s238_s11 = int_to_ptr.vmem [resolvable:$true] %s237_s11 }
  0x15   : > { %s1731_s9 = scalar_select %p1432_p8, 1, 0 }
  0x16   : > { %p1028_p9 = pneg %p1432_p8  ;;  %s250_s14 = sshll.u32 %s1340_s13, 4  ;;  %s251_s14 = int_to_ptr.vmem [resolvable:$true] %s250_s14 }
  0x17   : > { %s1341_s15 = smov [#allocation8]   ;;  %s1114_s17 = scalar_lea.vmem %s238_s11, 1024 }
  0x18   : > { %p1441_p11 = pnand %p1028_p9, %p1720_p1  ;;  %s263_s16 = sshll.u32 %s1341_s15, 4  ;;  %s264_s16 = int_to_ptr.vmem [resolvable:$true] %s263_s16 }
  0x19   : > { %p1115_p13 = scmp.ne.s32.totalorder %s238_s11, %s1114_s17  ;;  %p1122_p5 = scmp.lt.s32.totalorder %s238_s11, %s238_s11 }
  0x1a   : > { %p1105_p12 = pneg %p1441_p11  ;;  %p1123_p7 = scmp.lt.s32.totalorder %s1114_s17, %s1114_s17 }
  0x1c   : > { %p1117_p0 = pnand %p1115_p13, %p1105_p12  ;;  %p1124_p9 = por %p1123_p7, %p1122_p5 }
  0x1e   : > { %p1118_p3 = pneg %p1117_p0 }
  0x20   : > { %p1125_p10 = pnand %p1124_p9, %p1118_p3 }
  0x22   : > { %1128 = shalt.err (!%p1125_p10)
}
  0x23   : > { %s1722_s18 = smov 128   ;;  %s1723_s19 = smov 8  }
  0x24   : > { %s1733_s2 = sld [smem:[#allocation20_spill]]  ;;  %s1140_s22 = scalar_lea.vmem %s251_s14, 1024 }
  0x25   : > { %p1141_p13 = scmp.ne.s32.totalorder %s251_s14, %s1140_s22  ;;  %p1148_p3 = scmp.lt.s32.totalorder %s251_s14, %s251_s14 }
  0x26   : > { %p1149_p10 = scmp.lt.s32.totalorder %s1140_s22, %s1140_s22 }
  0x27   : > { %p1143_p0 = pnand %p1141_p13, %p1105_p12 }
  0x28   : > { %p1150_p7 = por %p1149_p10, %p1148_p3 }
  0x29   : > { %p1144_p5 = pneg %p1143_p0 }
  0x2a   : > { %1031 = dma.hbm_to_vmem [thread:$0]  (!%p1441_p11), %s1733_s2, 1024, %s238_s11, [#allocation6], %s1722_s18, %s1722_s18, %s1723_s19  }
  0x2b   : > { %p1151_p9 = pnand %p1150_p7, %p1144_p5 }
  0x2d   : > { %1154 = shalt.err (!%p1151_p9)
}
  0x2e   : > { %1034 = dma.hbm_to_vmem [thread:$0]  (!%p1441_p11), %s1715_s3, 1024, %s251_s14, [#allocation6], %s1722_s18, %s1722_s18, %s1723_s19  }
  0x2f   : > { %s1166_s11 = scalar_lea.vmem %s264_s16, 1024  ;;  %p1174_p3 = scmp.lt.s32.totalorder %s264_s16, %s264_s16 }
  0x30   : > { %p1167_p1 = scmp.ne.s32.totalorder %s264_s16, %s1166_s11  ;;  %p1175_p5 = scmp.lt.s32.totalorder %s1166_s11, %s1166_s11 }
  0x32   : > { %p1169_p13 = pnand %p1167_p1, %p1105_p12  ;;  %p1176_p10 = por %p1175_p5, %p1174_p3 }
  0x34   : > { %p1170_p0 = pneg %p1169_p13 }
  0x36   : > { %p1177_p7 = pnand %p1176_p10, %p1170_p0 }
  0x38   : > { %1180 = shalt.err (!%p1177_p7)
}
  0x39   : > { %1037 = dma.hbm_to_vmem [thread:$0]  (!%p1441_p11), %s1716_s4, 1024, %s264_s16, [#allocation9], %s1722_s18, %s1722_s18, %s1723_s19  }
  0x3a   : > { %s1481_s14 = sadd.s32 1, %s1337_s27   ;;  %s36_s17 = sadd.s32 1, %s1333_s26 }
  0x3b   : > { %s33_s12 = ssub.s32 %s1337_s27, %s1481_s14  ;;  %p43_p12 = scmp.ne.s32.totalorder %s1333_s26, %s1329_s25 }
  0x3c   : > { %p34_p1 = scmp.eq.s32.totalorder %s33_s12, 0  ;;  %p44_p9 = scmp.eq.s32.totalorder %s1337_s27, 0 }
  0x3d   : > { %p1055_p13 = scmp.lt.s32.totalorder %s1337_s27, 2  ;;  %p1495_p3 = por %p157_p2, %p43_p12 }
  0x3e   : > { %s1491_s20 = scalar_select %p34_p1, %s1333_s26, %s36_s17  }
  0x3f   : > { %p45_p0 = por %p44_p9, %p43_p12  ;;  %s277_s22 = sand.u32 1, %s1333_s26  }
  0x40   : > { %s1734_s21 = scalar_select %p1495_p3, 1, 0 }
  0x41   : > { %s917_s23 = sshll.u32 %s1337_s27, 8  ;;  %s888_s16 = sshll.u32 %s277_s22, 4 }
  0x42   : > { %s1735_s0 = sld [smem:[#allocation19_spill]]  ;;  %s281_s15 = scalar_lea.vmem [#allocation2], %s888_s16 }
  0x43   : > { %s288_s12 = sshll.u32 %s281_s15, 4  ;;  %p1506_p11 = pnand %p1055_p13, %p45_p0  ;;  %s1510_s12 = int_to_ptr.vmem [resolvable:$true] %s288_s12 }
  0x44   : > { %s1512_s29 = scalar_lea.sflag [#allocation3], %s277_s22 }
  0x45   : > { %p1183_p5 = pneg %p1506_p11 }
  0x48   : > { %s1504_s13 = scalar_lea.hbm %s1735_s0, %s917_s23  ;;  %s1186_s16 = scalar_lea.hbm %s1735_s0, 512 }
  0x49   : > { %s1181_s18 = scalar_lea.hbm %s1504_s13, 256  ;;  %p1187_p1 = scmp.lt.s32.totalorder %s1504_s13, %s1735_s0 }
  0x4a   : > { %p1182_p2 = scmp.ne.s32.totalorder %s1504_s13, %s1181_s18  ;;  %p1188_p12 = scmp.lt.s32.totalorder %s1186_s16, %s1181_s18 }
  0x4c   : > { %p1184_p10 = pnand %p1183_p5, %p1182_p2  ;;  %p1189_p9 = por %p1188_p12, %p1187_p1 }
  0x4e   : > { %p1185_p7 = pneg %p1184_p10 }
  0x50   : > { %p1190_p13 = pnand %p1189_p9, %p1185_p7 }
  0x52   : > { %1193 = shalt.err (!%p1190_p13)
}
  0x53   : > { %s1194_s22 = scalar_lea.vmem %s1510_s12, 256  ;;  %s1344_s19 = smov [#allocation2]  }
  0x54   : > { %p1195_p0 = scmp.ne.s32.totalorder %s1510_s12, %s1194_s22  ;;  %s1199_s2 = sshll.u32 %s1344_s19, 4  ;;  %s1200_s2 = int_to_ptr.vmem [resolvable:$false] %s1199_s2 }
  0x55   : > { %s1201_s23 = scalar_lea.vmem %s1200_s2, 512  ;;  %p1202_p10 = scmp.lt.s32.totalorder %s1510_s12, %s1200_s2 }
  0x56   : > { %p1197_p6 = pnand %p1195_p0, %p1183_p5  ;;  %p1203_p3 = scmp.lt.s32.totalorder %s1201_s23, %s1194_s22 }
  0x58   : > { %p1198_p2 = pneg %p1197_p6  ;;  %p1204_p4 = por %p1203_p3, %p1202_p10 }
  0x5a   : > { %p1205_p8 = pnand %p1204_p4, %p1198_p2 }
  0x5c   : > { %1208 = shalt.err (!%p1205_p8)
}
  0x5d   : > { %s1737_s18 = smov 8   ;;  %s1738_s10 = smov 128  }
  0x5e   : > { %1041 = dma.hbm_to_vmem [thread:$0]  (!%p1506_p11), %s1504_s13, 256, %s1510_s12, %s1512_s29, %s1738_s10, %s1738_s10, %s1737_s18  }
  0x5f   : > { %p1739_p6 = scmp.ne.s32.totalorder %s1731_s9, 0 }
  0x60   : > { %s1539_s19 = sand.u32 (!%p1739_p6), 1, %s1329_s25   ;;  %p1740_p4 = scmp.ne.s32.totalorder (!%p1739_p6), %s1729_s30, 0 }
  0x61   : > { %300 = sbr.rel (%p1739_p6) target bundleno = 675 (0x2a3), region = 40  ;;  %s1542_s2 = sshll.u32 (!%p1739_p6), %s1539_s19, 4 }
  0x62   : > { %s303_s17 = scalar_lea.sflag (!%p1739_p6), [#allocation3], %s1539_s19  ;;  %s306_s16 = scalar_lea.vmem (!%p1739_p6), [#allocation2], %s1542_s2 }
  0x66   : > { %1304 = dma.done.wait (%p1740_p4), %s303_s17, 256  }
  0x67   : > { %1306 = vsyncadd (%p1740_p4), %s303_s17, 4294967040  ;;  %p1741_p8 = scmp.eq.s32.totalorder %s1411_s28, 0 }
  0x69   : > { %1308 = dma.done.wait (%p1741_p8), [#allocation6], 2048   ;;  %p1742_p3 = pmov %p1741_p8 }
  0x6b   : > { %1310 = vsyncadd (%p1742_p3), [#allocation6], 4294965248  ;;  %p1743_p11 = pmov %p1742_p3 }
  0x6c   : > { %p1744_p5 = pmov %p1742_p3 }
  0x6d   : > { %1312 = dma.done.wait (%p1743_p11), [#allocation9], 1024  }
  0x6e   : > { %1314 = vsyncadd (%p1744_p5), [#allocation9], 4294966272  ;;  %vm366_vm0 = vcmask 523264   ;;  %v363_v0 = vld [vmem:[%s306_s16] sm:$0xff]  ;;  %v364_v1 = vld [vmem:[%s306_s16 + $0x8] sm:$0xff]  ;;  %s344_s9 = scalar_lea.vmem [#allocation10], %s1542_s2 }
  0x6f   : > { %v367_v2 = vsel %vm366_vm0, %v363_v0, 0.0  ;;  %v370_v3 = vsel %vm366_vm0, %v364_v1, 0.0  ;;  %v409_v14 = vld [vmem:[#allocation5 + $0x38] sm:$0xff]  ;;  %v408_v16 = vld [vmem:[#allocation5 + $0x30] sm:$0xff]  ;;  %v407_v18 = vld [vmem:[#allocation5 + $0x28] sm:$0xff]  ;;  %s687_s13 = sshll.u32 %s344_s9, 4  ;;  %s1587_s13 = int_to_ptr.vmem [resolvable:$true] %s687_s13 }
  0x70   : > { %368 = vadd.xlane.f32.xlu0 %v367_v2  ;;  %v500_v15 = vld [vmem:[#allocation7 + $0x38] sm:$0xff]  ;;  %951 = vmatprep.subr.mxu0 %v409_v14  ;;  %v499_v17 = vld [vmem:[#allocation7 + $0x30] sm:$0xff]  ;;  %v498_v19 = vld [vmem:[#allocation7 + $0x28] sm:$0xff]  ;;  %s351_s12 = scalar_lea.vmem [#allocation11], %s1542_s2  ;;  %s668_s15 = sand.u32 1, %s1411_s28  }
  0x71   : > { %970 = vmatprep.subr.mxu1 %v500_v15  ;;  %952 = vmatpush3.msra.mxu0 %v409_v14  ;;  %v406_v20 = vld [vmem:[#allocation5 + $0x20] sm:$0xff]  ;;  %v405_v22 = vld [vmem:[#allocation5 + $0x18] sm:$0xff]  ;;  %v404_v24 = vld [vmem:[#allocation5 + $0x10] sm:$0xff]  ;;  %s703_s11 = sshll.u32 %s351_s12, 4  ;;  %s1585_s22 = sshll.u32 %s1411_s28, 8  ;;  %s1589_s11 = int_to_ptr.vmem [resolvable:$true] %s703_s11 }
  0x72   : > { %971 = vmatpush3.msra.mxu1 %v500_v15  ;;  %953 = vmatprep.subr.mxu0 %v408_v16  ;;  %v497_v21 = vld [vmem:[#allocation7 + $0x20] sm:$0xff]  ;;  %v496_v23 = vld [vmem:[#allocation7 + $0x18] sm:$0xff]  ;;  %v495_v25 = vld [vmem:[#allocation7 + $0x10] sm:$0xff]  ;;  %s1597_s28 = scalar_lea.hbm %s1718_s6, %s1585_s22  ;;  %s1603_s16 = scalar_lea.hbm %s1717_s5, %s1585_s22 }
  0x73   : > { %972 = vmatprep.subr.mxu1 %v499_v17  ;;  %954 = vmatpush3.msra.mxu0 %v408_v16  ;;  %v403_v26 = vld [vmem:[#allocation5 + $0x8] sm:$0xff]  ;;  %v402_v28 = vld [vmem:[#allocation5] sm:$0xff]  ;;  %v585_v30 = vld [vmem:[#allocation8 + $0x38] sm:$0xff]  ;;  %s1607_s29 = scalar_lea.sflag [#allocation12], %s668_s15  ;;  %s1209_s30 = scalar_lea.vmem %s1589_s11, 256 }
  0x74   : > { %371 = vadd.xlane.f32.xlu0 %v370_v3  ;;  %973 = vmatpush3.msra.mxu1 %v499_v17  ;;  %v494_v27 = vld [vmem:[#allocation7 + $0x8] sm:$0xff]  ;;  %v493_v29 = vld [vmem:[#allocation7] sm:$0xff]  ;;  %v584_v44 = vld [vmem:[#allocation8 + $0x30] sm:$0xff]  ;;  %p1210_p7 = scmp.ne.s32.totalorder %s1589_s11, %s1209_s30  ;;  %p1745_p1 = scmp.ne.s32.totalorder %s1734_s21, 0 }
  0x75   : > { %955 = vmatprep.subr.mxu0 %v407_v18  ;;  %974 = vmatprep.subr.mxu1 %v498_v19  ;;  %v899_v38 = vld [vmem:[%s1713_s1] ss:$0 sm:$0xff]  ;;  %v583_v45 = vld [vmem:[#allocation8 + $0x28] sm:$0xff]  ;;  %v581_v47 = vld [vmem:[#allocation8 + $0x18] sm:$0xff]  ;;  %s1345_s23 = smov [#allocation11]  }
  0x76   : > { %956 = vmatpush3.msra.mxu0 %v407_v18  ;;  %975 = vmatpush3.msra.mxu1 %v498_v19  ;;  %v582_v46 = vld [vmem:[#allocation8 + $0x20] sm:$0xff]  ;;  %v580_v48 = vld [vmem:[#allocation8 + $0x10] sm:$0xff]  ;;  %v579_v49 = vld [vmem:[#allocation8 + $0x8] sm:$0xff]  ;;  %p1211_p12 = pnand %p1210_p7, %p1745_p1  ;;  %s1213_s18 = sshll.u32 %s1345_s23, 4  ;;  %s1214_s18 = int_to_ptr.vmem [resolvable:$false] %s1213_s18 }
  0x77   : > { %957 = vmatprep.subr.mxu0 %v406_v20  ;;  %976 = vmatprep.subr.mxu1 %v497_v21  ;;  %v578_v50 = vld [vmem:[#allocation8] sm:$0xff]  ;;  %s1215_s0 = scalar_lea.vmem %s1214_s18, 512  ;;  %p1216_p13 = scmp.lt.s32.totalorder %s1589_s11, %s1214_s18 }
  0x78   : > { %958 = vmatpush3.msra.mxu0 %v406_v20  ;;  %977 = vmatpush3.msra.mxu1 %v497_v21  ;;  %p1212_p9 = pneg %p1211_p12  ;;  %p1217_p0 = scmp.lt.s32.totalorder %s1215_s0, %s1209_s30 }
  0x79   : > { %959 = vmatprep.subr.mxu0 %v405_v22  ;;  %978 = vmatprep.subr.mxu1 %v496_v23 }
  0x7a   : > { %960 = vmatpush3.msra.mxu0 %v405_v22  ;;  %979 = vmatpush3.msra.mxu1 %v496_v23  ;;  %p1218_p2 = por %p1217_p0, %p1216_p13 }
  0x7b   : > { %961 = vmatprep.subr.mxu0 %v404_v24  ;;  %980 = vmatprep.subr.mxu1 %v495_v25 }
  0x7c   : > { %962 = vmatpush3.msra.mxu0 %v404_v24  ;;  %981 = vmatpush3.msra.mxu1 %v495_v25  ;;  %p1219_p10 = pnand %p1218_p2, %p1212_p9 }
  0x7d   : > { %963 = vmatprep.subr.mxu0 %v403_v26  ;;  %982 = vmatprep.subr.mxu1 %v494_v27 }
  0x7e   : > { %964 = vmatpush3.msra.mxu0 %v403_v26  ;;  %983 = vmatpush3.msra.mxu1 %v494_v27 }
  0x7f   : > { %965 = vmatprep.subr.mxu0 %v402_v28  ;;  %984 = vmatprep.subr.mxu1 %v493_v29 }
  0x80   : > { %966 = vmatpush3.msra.mxu0 %v402_v28  ;;  %985 = vmatpush3.msra.mxu1 %v493_v29 }
  0x81   : > { %989 = vmatprep.subr.mxu0 %v585_v30 }
  0xf9   : > { %v369_v4 = vpop.xlane.xlu0 %368 }
  0xfa   : > { %v374_v5 = vmul.f32 0.015625, %v369_v4 }
  0xfc   : > { %v1560_v6 = vsub.f32 %v363_v0, %v374_v5 }
  0xfd   : > { %v372_v7 = vpop.xlane.xlu0 %371 }
  0xfe   : > { %v375_v8 = vmul.f32 0.015625, %v372_v7  ;;  %v378_v9 = vmul.f32 %v1560_v6, %v1560_v6 }
 0x100   : > { %v1564_v10 = vsub.f32 %v364_v1, %v375_v8  ;;  %v380_v11 = vsel %vm366_vm0, %v378_v9, 0.0 }
 0x101   : > { %381 = vadd.xlane.f32.xlu1 %v380_v11 }
 0x102   : > { %v379_v12 = vmul.f32 %v1564_v10, %v1564_v10 }
 0x104   : > { %v383_v13 = vsel %vm366_vm0, %v379_v12, 0.0 }
 0x105   : > { %384 = vadd.xlane.f32.xlu1 %v383_v13 }
 0x18a   : > { %v382_v31 = vpop.xlane.xlu1 %381 }
 0x18b   : > { %v386_v32 = vmul.f32 0.015625, %v382_v31 }
 0x18d   : > { %v388_v33 = vadd.f32 1e-05, %v386_v32 }
 0x18e   : > { %v385_v34 = vpop.xlane.xlu1 %384 }
 0x18f   : > { %1099 = vrsqrt.f32 %v388_v33  ;;  %v387_v35 = vmul.f32 0.015625, %v385_v34 }
 0x191   : > { %v389_v36 = vadd.f32 1e-05, %v387_v35 }
 0x193   : > { %1101 = vrsqrt.f32 %v389_v36 }
 0x19c   : > { %v1100_v37 = vpop.eup %1099 }
 0x19d   : > { %v392_v39 = vmul.f32 %v1100_v37, %v1560_v6 }
 0x19f   : > { %v400_v40 = vmul.f32 %v899_v38, %v392_v39 }
 0x1a0   : > { %v1102_v41 = vpop.eup %1101 }
 0x1a1   : > { %v393_v42 = vmul.f32 %v1102_v41, %v1564_v10  ;;  %967 = vmatprep.mubr.msk.f32.mxu0 %vm366_vm0, %v400_v40  ;;  %986 = vmatprep.mubr.msk.f32.mxu1 %vm366_vm0, %v400_v40 }
 0x1a3   : > { %v401_v43 = vmul.f32 %v899_v38, %v393_v42 }
 0x1a5   : > { %968 = vmatmul.mubr.msk.f32.vlgmr.msra.gmra.mxu0 %vm366_vm0, %v401_v43  ;;  %987 = vmatmul.mubr.msk.f32.vlgmr.msra.gmra.mxu1 %vm366_vm0, %v401_v43 }
 0x1a6   : > { %990 = vmatpush3.msra.mxu0 %v585_v30  ;;  %1005 = vmatprep.mubr.msk.f32.mxu0 %vm366_vm0, %v400_v40 }
 0x1a7   : > { %991 = vmatprep.subr.mxu0 %v584_v44 }
 0x1a8   : > { %992 = vmatpush3.msra.mxu0 %v584_v44 }
 0x1a9   : > { %993 = vmatprep.subr.mxu0 %v583_v45 }
 0x1aa   : > { %994 = vmatpush3.msra.mxu0 %v583_v45 }
 0x1ab   : > { %995 = vmatprep.subr.mxu0 %v582_v46 }
 0x1ac   : > { %996 = vmatpush3.msra.mxu0 %v582_v46 }
 0x1ad   : > { %997 = vmatprep.subr.mxu0 %v581_v47 }
 0x1ae   : > { %998 = vmatpush3.msra.mxu0 %v581_v47 }
 0x1af   : > { %999 = vmatprep.subr.mxu0 %v580_v48 }
 0x1b0   : > { %1000 = vmatpush3.msra.mxu0 %v580_v48 }
 0x1b1   : > { %1001 = vmatprep.subr.mxu0 %v579_v49 }
 0x1b2   : > { %1002 = vmatpush3.msra.mxu0 %v579_v49 }
 0x1b3   : > { %1003 = vmatprep.subr.mxu0 %v578_v50 }
 0x1b4   : > { %1004 = vmatpush3.msra.mxu0 %v578_v50 }
 0x1b5   : > { %1006 = vmatmul.mubr.msk.f32.vlgmr.msra.gmra.mxu0 %vm366_vm0, %v401_v43 }
 0x265   : > { %v969_v51 = vpop.f32.mrf.mxu0  ;;  %v988_v52 = vpop.f32.mrf.mxu1 }
 0x266   : > { %492 = vst.msk [vmem:[%s344_s9 + $0x8] sm:$0xff] %vm366_vm0, %v969_v51  ;;  %577 = vst.msk [vmem:[%s351_s12 + $0x8] sm:$0xff] %vm366_vm0, %v988_v52 }
 0x267   : > { %v482_v53 = vpop.f32.mrf.mxu0  ;;  %v567_v54 = vpop.f32.mrf.mxu1 }
 0x268   : > { %491 = vst.msk [vmem:[%s344_s9] sm:$0xff] %vm366_vm0, %v482_v53  ;;  %576 = vst.msk [vmem:[%s351_s12] sm:$0xff] %vm366_vm0, %v567_v54 }
 0x269   : > { %1222 = shalt.err (!%p1219_p10)
}
 0x26a   : > { %s1223_s9 = scalar_lea.hbm %s1597_s28, 256  ;;  %s1227_s10 = scalar_lea.hbm %s1718_s6, 512 }
 0x26b   : > { %p1224_p6 = scmp.ne.s32.totalorder %s1597_s28, %s1223_s9  ;;  %p1228_p3 = scmp.lt.s32.totalorder %s1597_s28, %s1718_s6 }
 0x26c   : > { %p1229_p11 = scmp.lt.s32.totalorder %s1227_s10, %s1223_s9 }
 0x26d   : > { %p1225_p4 = pnand %p1224_p6, %p1745_p1 }
 0x26e   : > { %p1230_p5 = por %p1229_p11, %p1228_p3 }
 0x26f   : > { %p1226_p8 = pneg %p1225_p4 }
 0x271   : > { %p1231_p7 = pnand %p1230_p5, %p1226_p8 }
 0x273   : > { %1234 = shalt.err (!%p1231_p7)
}
 0x274   : > { %s1346_s0 = smov 128   ;;  %s1347_s30 = smov 8  }
 0x275   : > { %1023 = dma.vmem_to_hbm [thread:$0]  (%p1745_p1), %s1589_s11, 256, %s1597_s28, %s1607_s29, %s1346_s0, %s1346_s0, %s1347_s30  }
 0x276   : > { %s664_s18 = scalar_lea.sflag [#allocation4], %s1539_s19  ;;  %s1235_s9 = scalar_lea.vmem %s1587_s13, 256 }
 0x277   : > { %p1236_p12 = scmp.ne.s32.totalorder %s1587_s13, %s1235_s9  ;;  %s1348_s12 = smov [#allocation10]  }
 0x278   : > { %s1239_s15 = sshll.u32 %s1348_s12, 4  ;;  %s1240_s15 = int_to_ptr.vmem [resolvable:$false] %s1239_s15 }
 0x279   : > { %p1237_p9 = pnand %p1236_p12, %p1745_p1  ;;  %s1241_s10 = scalar_lea.vmem %s1240_s15, 512 }
 0x27a   : > { %p1242_p0 = scmp.lt.s32.totalorder %s1587_s13, %s1240_s15  ;;  %p1243_p2 = scmp.lt.s32.totalorder %s1241_s10, %s1235_s9 }
 0x27b   : > { %p1238_p13 = pneg %p1237_p9 }
 0x27c   : > { %p1244_p10 = por %p1243_p2, %p1242_p0 }
 0x27e   : > { %p1245_p6 = pnand %p1244_p10, %p1238_p13 }
 0x280   : > { %1248 = shalt.err (!%p1245_p6)
}
 0x281   : > { %s1249_s11 = scalar_lea.hbm %s1603_s16, 256  ;;  %s1253_s17 = scalar_lea.hbm %s1717_s5, 512 }
 0x282   : > { %p1250_p4 = scmp.ne.s32.totalorder %s1603_s16, %s1249_s11  ;;  %p1254_p11 = scmp.lt.s32.totalorder %s1603_s16, %s1717_s5 }
 0x283   : > { %p1255_p5 = scmp.lt.s32.totalorder %s1253_s17, %s1249_s11 }
 0x284   : > { %p1251_p8 = pnand %p1250_p4, %p1745_p1 }
 0x285   : > { %p1256_p7 = por %p1255_p5, %p1254_p11 }
 0x286   : > { %p1252_p3 = pneg %p1251_p8 }
 0x288   : > { %p1257_p12 = pnand %p1256_p7, %p1252_p3 }
 0x28a   : > { %1260 = shalt.err (!%p1257_p12)
}
 0x28b   : > { %1022 = dma.vmem_to_hbm [thread:$0]  (%p1745_p1), %s1587_s13, 256, %s1603_s16, %s664_s18, %s1346_s0, %s1346_s0, %s1347_s30   ;;  %v1007_v55 = vpop.f32.mrf.mxu0 }
 0x28c   : > { %s358_s9 = scalar_lea.vmem [#allocation13], %s1542_s2  ;;  %s1665_s19 = scalar_lea.hbm %s1719_s7, %s1585_s22 }
 0x28d   : > { %s719_s15 = sshll.u32 %s358_s9, 4  ;;  %662 = vst.msk [vmem:[%s358_s9 + $0x8] sm:$0xff] %vm366_vm0, %v1007_v55  ;;  %v652_v56 = vpop.f32.mrf.mxu0  ;;  %s1349_s2 = smov [#allocation13]   ;;  %s1659_s15 = int_to_ptr.vmem [resolvable:$true] %s719_s15 }
 0x28e   : > { %661 = vst.msk [vmem:[%s358_s9] sm:$0xff] %vm366_vm0, %v652_v56  ;;  %s1261_s28 = scalar_lea.vmem %s1659_s15, 256  ;;  %s1265_s13 = sshll.u32 %s1349_s2, 4  ;;  %s1266_s13 = int_to_ptr.vmem [resolvable:$false] %s1265_s13 }
 0x28f   : > { %p1262_p9 = scmp.ne.s32.totalorder %s1659_s15, %s1261_s28  ;;  %s1267_s16 = scalar_lea.vmem %s1266_s13, 512 }
 0x290   : > { %p1268_p2 = scmp.lt.s32.totalorder %s1659_s15, %s1266_s13  ;;  %p1269_p10 = scmp.lt.s32.totalorder %s1267_s16, %s1261_s28 }
 0x291   : > { %p1263_p13 = pnand %p1262_p9, %p1745_p1 }
 0x292   : > { %p1270_p6 = por %p1269_p10, %p1268_p2 }
 0x293   : > { %p1264_p0 = pneg %p1263_p13 }
 0x295   : > { %p1271_p4 = pnand %p1270_p6, %p1264_p0 }
 0x297   : > { %1274 = shalt.err (!%p1271_p4)
}
 0x298   : > { %s1275_s22 = scalar_lea.hbm %s1665_s19, 256  ;;  %s1279_s23 = scalar_lea.hbm %s1719_s7, 512 }
 0x299   : > { %p1276_p8 = scmp.ne.s32.totalorder %s1665_s19, %s1275_s22  ;;  %p1280_p5 = scmp.lt.s32.totalorder %s1665_s19, %s1719_s7 }
 0x29a   : > { %p1281_p7 = scmp.lt.s32.totalorder %s1279_s23, %s1275_s22 }
 0x29b   : > { %p1277_p3 = pnand %p1276_p8, %p1745_p1 }
 0x29c   : > { %p1282_p12 = por %p1281_p7, %p1280_p5 }
 0x29d   : > { %p1278_p11 = pneg %p1277_p3 }
 0x29f   : > { %p1283_p9 = pnand %p1282_p12, %p1278_p11 }
 0x2a1   : > { %1286 = shalt.err (!%p1283_p9)
}
 0x2a2   : > { %1024 = dma.vmem_to_hbm [thread:$0]  (%p1745_p1), %s1659_s15, 256, %s1665_s19, %s1607_s29, %s1346_s0, %s1346_s0, %s1347_s30  }
 0x2a3 PF: > { %s734_s10 = sand.u32 1, %s1325_s24   ;;  %p1746_p13 = scmp.ne.s32.totalorder %s1730_s8, 0 }
 0x2a4   : > { %p1747_p0 = scmp.ge.s32.totalorder %s1337_s27, 2  ;;  %s735_s11 = scalar_lea.sflag [#allocation4], %s734_s10 }
 0x2a6   : > { %p1043_p2 = pnand %p1747_p0, %p1746_p13 }
 0x2a8   : > { %p1044_p10 = pneg %p1043_p2 }
 0x2aa   : > { %1316 = dma.done.wait (%p1044_p10), %s735_s11, 256  }
 0x2ab   : > { %1318 = vsyncadd (%p1044_p10), %s735_s11, 4294967040  ;;  %s1748_s21 = sadd.s32 4294967294, %s1337_s27  }
 0x2ac   : > { %s743_s28 = sand.u32 1, %s1748_s21  }
 0x2ad   : > { %s744_s2 = scalar_lea.sflag [#allocation12], %s743_s28 }
 0x2ae   : > { %1320 = dma.done.wait (%p1044_p10), %s744_s2, 512  }
 0x2af   : > { %1322 = vsyncadd (%p1044_p10), %s744_s2, 4294966784  ;;  %p26_p1 = scmp.ge.s32.totalorder %s1481_s14, 4   ;;  %s1749_s24 = smov %s1329_s25 }
 0x2b0   : > { %s1750_s25 = smov %s1333_s26  ;;  %s1751_s26 = smov %s1491_s20 }
 0x2b1   : > { %s1752_s27 = smov %s1481_s14  ;;  %28 = sbr.rel (!%p26_p1) target bundleno = 12 (0xc), region = 129 }
 0x2b6   :  { %758 = vsyncpa [#allocation3], 1 }
 0x2b7   :  { %760 = vsyncpa [#allocation3 + $0x1], 1 }
 0x2b8   :  { %761 = vsyncpa [#allocation6], 1 }
 0x2b9   :  { %762 = vsyncpa [#allocation9], 1 }
 0x2ba   :  { %763 = vsyncpa [#allocation4], 1 }
 0x2bb   :  { %765 = vsyncpa [#allocation4 + $0x1], 1 }
 0x2bc   :  { %766 = vsyncpa [#allocation12], 1 }
 0x2bd   :  { %768 = vsyncpa [#allocation12 + $0x1], 1 }

</bundles_post_ra>
